<compile_context>
chip_gen: v5e
topology: v5e:2x2
jax: 0.10.0
libtpu: 0.0.40
codegen_flags: <defaults>
</compile_context>

<pallas_src>
import jax
import jax.numpy as jnp
from jax.experimental import pallas as pl
from jax.experimental.pallas import tpu as pltpu


# ------------------------------ packing helpers ------------------------------
def _round_up(x, m):
    return (x + m - 1) // m * m


def _pack_blocks(blocks, dtype, row_align, lane_pad=128):
    """Stack 2-D blocks row-wise into one (rows, lanes) buffer.

    Each block starts at a row offset aligned to `row_align`; columns are
    left-aligned and the buffer is lane-padded. Returns (buffer, row_offsets).
    """
    ncols = _round_up(max(b.shape[1] for b in blocks), lane_pad)
    offs, r = [], 0
    for b in blocks:
        offs.append(r)
        r = _round_up(r + b.shape[0], row_align)
    buf = jnp.zeros((r, ncols), dtype)
    for b, o in zip(blocks, offs):
        buf = buf.at[o:o + b.shape[0], :b.shape[1]].set(b.astype(dtype))
    return buf, offs


def pack_params(params, dims):
    """Fuse + pack the 22 CrossGCNLayer parameters into two VMEM buffers."""
    (w_iaf, b_iaf, w_iai, b_iai, w_iap, b_iap,
     w_saf, b_saf, w_san, b_san, w_sap, b_sap,
     w_ig, b_ig, w_sg, b_sg, w_fg, b_fg, w_g, b_g, w_o, b_o) = params
    del b_iap, b_sap  # constant logit offsets cancel in the softmax
    in_dims, que_dims = dims["in_dims"], dims["que_dims"]
    img_dim, sem_dim = dims["img_dim"], dims["sem_dim"]
    Pi, Ps, G = dims["img_att_proj_dim"], dims["sem_att_proj_dim"], dims["gate_dim"]

    # (1) fuse the two node-side attention projections; split fact-rows / que-rows
    w_node = jnp.concatenate([w_iaf, w_saf], axis=1)          # (in+que, Pi+Ps)
    w_node_f, w_node_q = w_node[:in_dims], w_node[in_dims:]
    b_node = jnp.concatenate([b_iaf, b_saf], axis=1)          # (1, Pi+Ps)

    # (2) fuse the three gate projections into one block-diagonal matmul
    d_cat = in_dims + img_dim + sem_dim
    w_gate_blk = jnp.zeros((d_cat, 3 * G), jnp.float32)
    w_gate_blk = w_gate_blk.at[:in_dims, :G].set(w_fg)
    w_gate_blk = w_gate_blk.at[in_dims:in_dims + img_dim, G:2 * G].set(w_ig)
    w_gate_blk = w_gate_blk.at[in_dims + img_dim:, 2 * G:].set(w_sg)
    b_cat = jnp.concatenate([b_fg, b_ig, b_sg], axis=1)       # (1, 3G)

    # (3) one bf16 buffer for all weight matrices (row offsets 16-aligned)
    w_names = ("w_node_f", "w_node_q", "w_iai", "w_san", "w_gate_blk", "w_g", "w_o")
    wbuf, w_offs = _pack_blocks(
        [w_node_f, w_node_q, w_iai, w_san, w_gate_blk, w_g, w_o],
        jnp.bfloat16, row_align=16)

    # (4) one f32 buffer for all bias rows + attention-projection row vectors
    a_names = ("b_node", "b_iai", "b_san", "b_cat", "b_g", "b_o", "w_iap", "w_sap")
    aux, a_offs = _pack_blocks(
        [b_node, b_iai, b_san, b_cat, b_g, b_o, w_iap, w_sap],
        jnp.float32, row_align=8)

    return wbuf, aux, dict(zip(w_names, w_offs)), dict(zip(a_names, a_offs))


# ---------------------------------- kernel -----------------------------------
def _make_kernel(dims, w_offs, a_offs):
    in_dims, que_dims = dims["in_dims"], dims["que_dims"]
    img_dim, sem_dim = dims["img_dim"], dims["sem_dim"]
    Pi, Ps = dims["img_att_proj_dim"], dims["sem_att_proj_dim"]
    G3 = 3 * dims["gate_dim"]
    out_dims = dims["out_dims"]
    d_cat = in_dims + img_dim + sem_dim
    f32, bf16 = jnp.float32, jnp.bfloat16

    def kernel(fact_ref, que_ref, img_ref, sem_ref, wbuf_ref, aux_ref, out_ref):
        def w(name, nrows, ncols):               # bf16 weight block (static slice)
            o = w_offs[name]
            return wbuf_ref[o:o + nrows, :ncols]

        def a(name, ncols):                      # f32 bias / att-vector row
            o = a_offs[name]
            return aux_ref[o:o + 1, :ncols]

        fact_f32 = fact_ref[...]                 # (N, in_dims)
        fact_bf = fact_f32.astype(bf16)

        # Fused node projection for both attention heads; the question-embed
        # contribution is a single (1, Pi+Ps) row folded in like a bias.
        que_row = (jnp.dot(que_ref[...].astype(bf16),
                           w("w_node_q", que_dims, Pi + Ps),
                           preferred_element_type=f32)
                   + a("b_node", Pi + Ps))                           # (1, Pi+Ps)
        node_proj = (jnp.dot(fact_bf, w("w_node_f", in_dims, Pi + Ps),
                             preferred_element_type=f32)
                     + que_row)                                      # (N, Pi+Ps)

        def cross_att(feat_f32, w_feat, b_feat, np_head, w_att_row):
            # feat: (K, D); np_head: (N, P); w_att_row: (1, P)
            feat_bf = feat_f32.astype(bf16)
            feat_proj = (jnp.dot(feat_bf, w_feat, preferred_element_type=f32)
                         + b_feat)                                   # (K, P)
            # tanh(node_proj[n] + feat_proj[k]) -> (N, K, P); P kept on lanes
            t = jnp.tanh(np_head[:, None, :] + feat_proj[None, :, :])
            # att_proj (Linear P -> 1); its bias cancels in the softmax (dropped)
            logits = jnp.sum(t * w_att_row[None, :, :], axis=-1)     # (N, K)
            m = jnp.max(logits, axis=-1, keepdims=True)
            e = jnp.exp(logits - m)
            att = e * pl.reciprocal(jnp.sum(e, axis=-1, keepdims=True), approx=True)
            return jnp.dot(att.astype(bf16), feat_bf,
                           preferred_element_type=f32)               # (N, D)

        img_agg = cross_att(img_ref[...], w("w_iai", img_dim, Pi), a("b_iai", Pi),
                            node_proj[:, :Pi], a("w_iap", Pi))
        sem_agg = cross_att(sem_ref[...], w("w_san", sem_dim, Ps), a("b_san", Ps),
                            node_proj[:, Pi:Pi + Ps], a("w_sap", Ps))

        # Fused gate projections: one block-diagonal (d_cat, 3G) matmul
        x_cat = jnp.concatenate([fact_f32, img_agg, sem_agg], axis=1)  # (N, d_cat)
        cat = (jnp.dot(x_cat.astype(bf16), w("w_gate_blk", d_cat, G3),
                       preferred_element_type=f32)
               + a("b_cat", G3))                                       # (N, 3G)
        gate = jax.nn.sigmoid(
            jnp.dot(cat.astype(bf16), w("w_g", G3, G3),
                    preferred_element_type=f32) + a("b_g", G3))
        h = (jnp.dot((gate * cat).astype(bf16), w("w_o", G3, out_dims),
                     preferred_element_type=f32)
             + a("b_o", out_dims))
        out_ref[...] = h.astype(out_ref.dtype)

    return kernel


def cross_gcn_layer(fact_h, que_embed, img_feat, sem_feat, packed, dims):
    """Returns the new fact-graph node features 'h' of shape (N_fact, out_dims)."""
    wbuf, aux, w_offs, a_offs = packed
    n, in_dims = fact_h.shape
    n_img, n_sem = img_feat.shape[0], sem_feat.shape[0]
    que_dims = dims["que_dims"]
    img_dim, sem_dim = dims["img_dim"], dims["sem_dim"]
    Pi, Ps = dims["img_att_proj_dim"], dims["sem_att_proj_dim"]
    G3, out_dims = 3 * dims["gate_dim"], dims["out_dims"]

    inputs = (fact_h, que_embed.reshape(1, -1), img_feat, sem_feat, wbuf, aux)

    mm_flops = 2 * (que_dims * (Pi + Ps) + n * in_dims * (Pi + Ps)
                    + n_img * img_dim * Pi + n_sem * sem_dim * Ps
                    + n * n_img * img_dim + n * n_sem * sem_dim
                    + n * (in_dims + img_dim + sem_dim) * G3
                    + n * G3 * G3 + n * G3 * out_dims)
    ew_flops = 4 * n * (n_img * Pi + n_sem * Ps) + 6 * n * G3
    transcendentals = (n * (n_img * Pi + n_sem * Ps)   # tanh
                       + n * (n_img + n_sem)           # exp
                       + n * G3)                       # sigmoid
    cost = pl.CostEstimate(
        flops=mm_flops + ew_flops,
        transcendentals=transcendentals,
        bytes_accessed=sum(int(x.size) * x.dtype.itemsize for x in inputs)
                       + n * out_dims * 4)

    vmem = pl.BlockSpec(memory_space=pltpu.MemorySpace.VMEM)
    # TODO(synk): for batched multi-graph workloads, add a leading batch grid
    # axis with dimension_semantics=("parallel",) (uses both v7x TensorCores and
    # amortizes the packed-weight DMAs); a single graph is grid-less here.
    return pl.pallas_call(
        _make_kernel(dims, w_offs, a_offs),
        out_shape=jax.ShapeDtypeStruct((n, out_dims), jnp.float32),
        in_specs=[vmem] * len(inputs),
        out_specs=vmem,
        cost_estimate=cost,
    )(*inputs)


# ----------------------------- parameter setup -------------------------------
def init_linear(key, in_f, out_f):
    """PyTorch nn.Linear-style uniform init; weight stored as (in, out) = W.T."""
    k = 1.0 / float(in_f) ** 0.5
    kw, kb = jax.random.split(key)
    w = jax.random.uniform(kw, (in_f, out_f), jnp.float32, -k, k)
    b = jax.random.uniform(kb, (1, out_f), jnp.float32, -k, k)
    return w, b


def reference(fact_h, que, img_feat, sem_feat, p):
    """Pure-JAX reference with the same bf16-matmul / f32-accumulate recipe."""
    (w_iaf, b_iaf, w_iai, b_iai, w_iap, b_iap,
     w_saf, b_saf, w_san, b_san, w_sap, b_sap,
     w_ig, b_ig, w_sg, b_sg, w_fg, b_fg, w_g, b_g, w_o, b_o) = p

    def mm(a_, b_):
        return jnp.dot(a_.astype(jnp.bfloat16), b_.astype(jnp.bfloat16),
                       preferred_element_type=jnp.float32)

    n = fact_h.shape[0]
    node_feat = jnp.concatenate([fact_h, jnp.tile(que[None, :], (n, 1))], axis=1)

    def att(feat, wn, bn, wf, bf_, wa, ba):
        fp = mm(feat, wf) + bf_
        npj = mm(node_feat, wn) + bn
        t = jnp.tanh(npj[:, None, :] + fp[None, :, :])
        logits = jnp.sum(t * wa, axis=-1) + ba[0, 0]
        a_ = jax.nn.softmax(logits, axis=1)
        return mm(a_, feat)

    img = att(img_feat, w_iaf, b_iaf, w_iai, b_iai, w_iap, b_iap)
    sem = att(sem_feat, w_saf, b_saf, w_san, b_san, w_sap, b_sap)
    cat = jnp.concatenate([mm(fact_h, w_fg) + b_fg,
                           mm(img, w_ig) + b_ig,
                           mm(sem, w_sg) + b_sg], axis=1)
    gate = jax.nn.sigmoid(mm(cat, w_g) + b_g)
    return mm(gate * cat, w_o) + b_o


if __name__ == "__main__":
    in_dims, out_dims = 32, 32
    img_att_proj_dim, sem_att_proj_dim = 32, 32
    img_dim, sem_dim = 32, 32
    gate_dim, que_dims = 32, 32
    n_fact, n_img, n_sem = 8, 36, 8   # 36 image regions are hard-coded in torch

    dims = dict(in_dims=in_dims, out_dims=out_dims,
                img_att_proj_dim=img_att_proj_dim,
                sem_att_proj_dim=sem_att_proj_dim,
                img_dim=img_dim, sem_dim=sem_dim,
                gate_dim=gate_dim, que_dims=que_dims)

    root = jax.random.PRNGKey(0)
    keys = jax.random.split(root, 16)

    fact_h = jax.random.normal(keys[0], (n_fact, in_dims), jnp.float32)
    que_embed = jax.random.normal(keys[1], (que_dims,), jnp.float32)
    img_feat = jax.random.normal(keys[2], (n_img, img_dim), jnp.float32)
    sem_feat = jax.random.normal(keys[3], (n_sem, sem_dim), jnp.float32)

    w_iaf, b_iaf = init_linear(keys[4], in_dims + que_dims, img_att_proj_dim)
    w_iai, b_iai = init_linear(keys[5], img_dim, img_att_proj_dim)
    w_iap_raw, b_iap = init_linear(keys[6], img_att_proj_dim, 1)
    w_iap = w_iap_raw.T                                   # (1, Pi)
    w_saf, b_saf = init_linear(keys[7], in_dims + que_dims, sem_att_proj_dim)
    w_san, b_san = init_linear(keys[8], sem_dim, sem_att_proj_dim)
    w_sap_raw, b_sap = init_linear(keys[9], sem_att_proj_dim, 1)
    w_sap = w_sap_raw.T                                   # (1, Ps)
    w_ig, b_ig = init_linear(keys[10], img_dim, gate_dim)
    w_sg, b_sg = init_linear(keys[11], sem_dim, gate_dim)
    w_fg, b_fg = init_linear(keys[12], in_dims, gate_dim)
    w_g, b_g = init_linear(keys[13], 3 * gate_dim, 3 * gate_dim)
    w_o, b_o = init_linear(keys[14], 3 * gate_dim, out_dims)

    params = (w_iaf, b_iaf, w_iai, b_iai, w_iap, b_iap,
              w_saf, b_saf, w_san, b_san, w_sap, b_sap,
              w_ig, b_ig, w_sg, b_sg, w_fg, b_fg, w_g, b_g, w_o, b_o)

    packed = pack_params(params, dims)
    out = jax.block_until_ready(
        cross_gcn_layer(fact_h, que_embed, img_feat, sem_feat, packed, dims))

    ref = jax.block_until_ready(
        reference(fact_h, que_embed, img_feat, sem_feat, params))
    assert out.shape == (n_fact, out_dims)
    assert jnp.max(jnp.abs(out - ref)) < 2e-2, "Pallas kernel mismatch vs JAX reference"

    print("KERNEL_OK")
</pallas_src>

<mosaic_0001>
module attributes {stable_mosaic.version = 11 : i64} {
  func.func @kernel(%arg0: memref<8x32xf32, #tpu.memory_space<vmem>>, %arg1: memref<1x32xf32, #tpu.memory_space<vmem>>, %arg2: memref<36x32xf32, #tpu.memory_space<vmem>>, %arg3: memref<8x32xf32, #tpu.memory_space<vmem>>, %arg4: memref<416x128xbf16, #tpu.memory_space<vmem>>, %arg5: memref<64x128xf32, #tpu.memory_space<vmem>>, %arg6: memref<8x32xf32, #tpu.memory_space<vmem>>) attributes {dimension_semantics = [], scalar_prefetch = 0 : i64, scratch_operands = 0 : i64, tpu.core_type = #tpu.core_type<tc>} {
    %c0 = arith.constant 0 : index
    %c0_0 = arith.constant 0 : index
    %0 = vector.load %arg0[%c0, %c0_0] : memref<8x32xf32, #tpu.memory_space<vmem>>, vector<8x32xf32>
    %1 = arith.truncf %0 : vector<8x32xf32> to vector<8x32xbf16>
    %c0_1 = arith.constant 0 : index
    %c0_2 = arith.constant 0 : index
    %2 = vector.load %arg1[%c0_1, %c0_2] : memref<1x32xf32, #tpu.memory_space<vmem>>, vector<1x32xf32>
    %3 = arith.truncf %2 : vector<1x32xf32> to vector<1x32xbf16>
    %c32 = arith.constant 32 : index
    %c0_3 = arith.constant 0 : index
    %4 = vector.load %arg4[%c32, %c0_3] : memref<416x128xbf16, #tpu.memory_space<vmem>>, vector<32x64xbf16>
    %cst = arith.constant dense<0.000000e+00> : vector<1x64xf32>
    %5 = tpu.matmul %3, %4, %cst {dimension_numbers = #tpu.dot_dimension_numbers<[1], [0], [0], [1], [0, 0, 1, 1], [], []>} : vector<1x32xbf16>, vector<32x64xbf16>, vector<1x64xf32> -> vector<1x64xf32>
    %c0_4 = arith.constant 0 : index
    %c0_5 = arith.constant 0 : index
    %6 = vector.load %arg5[%c0_4, %c0_5] : memref<64x128xf32, #tpu.memory_space<vmem>>, vector<1x64xf32>
    %7 = arith.addf %5, %6 : vector<1x64xf32>
    %c0_6 = arith.constant 0 : index
    %c0_7 = arith.constant 0 : index
    %8 = vector.load %arg4[%c0_6, %c0_7] : memref<416x128xbf16, #tpu.memory_space<vmem>>, vector<32x64xbf16>
    %cst_8 = arith.constant dense<0.000000e+00> : vector<8x64xf32>
    %9 = tpu.matmul %1, %8, %cst_8 {dimension_numbers = #tpu.dot_dimension_numbers<[1], [0], [0], [1], [0, 0, 1, 1], [], []>} : vector<8x32xbf16>, vector<32x64xbf16>, vector<8x64xf32> -> vector<8x64xf32>
    %10 = vector.broadcast %7 : vector<1x64xf32> to vector<8x64xf32>
    %11 = arith.addf %9, %10 : vector<8x64xf32>
    %c0_9 = arith.constant 0 : index
    %c0_10 = arith.constant 0 : index
    %12 = vector.load %arg2[%c0_9, %c0_10] : memref<36x32xf32, #tpu.memory_space<vmem>>, vector<36x32xf32>
    %c64 = arith.constant 64 : index
    %c0_11 = arith.constant 0 : index
    %13 = vector.load %arg4[%c64, %c0_11] : memref<416x128xbf16, #tpu.memory_space<vmem>>, vector<32x32xbf16>
    %c8 = arith.constant 8 : index
    %c0_12 = arith.constant 0 : index
    %14 = vector.load %arg5[%c8, %c0_12] : memref<64x128xf32, #tpu.memory_space<vmem>>, vector<1x32xf32>
    %15 = vector.extract_strided_slice %11 {offsets = [0, 0], sizes = [8, 32], strides = [1, 1]} : vector<8x64xf32> to vector<8x32xf32>
    %c48 = arith.constant 48 : index
    %c0_13 = arith.constant 0 : index
    %16 = vector.load %arg5[%c48, %c0_13] : memref<64x128xf32, #tpu.memory_space<vmem>>, vector<1x32xf32>
    %17 = arith.truncf %12 : vector<36x32xf32> to vector<36x32xbf16>
    %cst_14 = arith.constant dense<0.000000e+00> : vector<36x32xf32>
    %18 = tpu.matmul %17, %13, %cst_14 {dimension_numbers = #tpu.dot_dimension_numbers<[1], [0], [0], [1], [0, 0, 1, 1], [], []>} : vector<36x32xbf16>, vector<32x32xbf16>, vector<36x32xf32> -> vector<36x32xf32>
    %19 = vector.broadcast %14 : vector<1x32xf32> to vector<36x32xf32>
    %20 = arith.addf %18, %19 : vector<36x32xf32>
    %21 = vector.shape_cast %15 : vector<8x32xf32> to vector<8x1x32xf32>
    %22 = vector.shape_cast %20 : vector<36x32xf32> to vector<1x36x32xf32>
    %23 = vector.broadcast %21 : vector<8x1x32xf32> to vector<8x36x32xf32>
    %24 = vector.broadcast %22 : vector<1x36x32xf32> to vector<8x36x32xf32>
    %25 = arith.addf %23, %24 : vector<8x36x32xf32>
    %26 = math.tanh %25 : vector<8x36x32xf32>
    %27 = vector.shape_cast %16 : vector<1x32xf32> to vector<1x1x32xf32>
    %28 = vector.broadcast %27 : vector<1x1x32xf32> to vector<8x36x32xf32>
    %29 = arith.mulf %26, %28 : vector<8x36x32xf32>
    %cst_15 = arith.constant dense<0.000000e+00> : vector<8x36xf32>
    %30 = vector.multi_reduction <add>, %29, %cst_15 [2] : vector<8x36x32xf32> to vector<8x36xf32>
    %cst_16 = arith.constant dense<0xFF800000> : vector<8xf32>
    %31 = vector.multi_reduction <maximumf>, %30, %cst_16 [1] : vector<8x36xf32> to vector<8xf32>
    %32 = vector.shape_cast %31 : vector<8xf32> to vector<8x1xf32>
    %33 = vector.broadcast %32 : vector<8x1xf32> to vector<8x36xf32>
    %34 = arith.subf %30, %33 : vector<8x36xf32>
    %35 = math.exp %34 : vector<8x36xf32>
    %cst_17 = arith.constant dense<0.000000e+00> : vector<8xf32>
    %36 = vector.multi_reduction <add>, %35, %cst_17 [1] : vector<8x36xf32> to vector<8xf32>
    %37 = vector.shape_cast %36 : vector<8xf32> to vector<8x1xf32>
    %38 = tpu.reciprocal %37 {approx = true} : vector<8x1xf32> -> vector<8x1xf32>
    %39 = vector.broadcast %38 : vector<8x1xf32> to vector<8x36xf32>
    %40 = arith.mulf %35, %39 : vector<8x36xf32>
    %41 = arith.truncf %40 : vector<8x36xf32> to vector<8x36xbf16>
    %cst_18 = arith.constant dense<0.000000e+00> : vector<8x32xf32>
    %42 = tpu.matmul %41, %17, %cst_18 {dimension_numbers = #tpu.dot_dimension_numbers<[1], [0], [0], [1], [0, 0, 1, 1], [], []>} : vector<8x36xbf16>, vector<36x32xbf16>, vector<8x32xf32> -> vector<8x32xf32>
    %c0_19 = arith.constant 0 : index
    %c0_20 = arith.constant 0 : index
    %43 = vector.load %arg3[%c0_19, %c0_20] : memref<8x32xf32, #tpu.memory_space<vmem>>, vector<8x32xf32>
    %c96 = arith.constant 96 : index
    %c0_21 = arith.constant 0 : index
    %44 = vector.load %arg4[%c96, %c0_21] : memref<416x128xbf16, #tpu.memory_space<vmem>>, vector<32x32xbf16>
    %c16 = arith.constant 16 : index
    %c0_22 = arith.constant 0 : index
    %45 = vector.load %arg5[%c16, %c0_22] : memref<64x128xf32, #tpu.memory_space<vmem>>, vector<1x32xf32>
    %46 = vector.extract_strided_slice %11 {offsets = [0, 32], sizes = [8, 32], strides = [1, 1]} : vector<8x64xf32> to vector<8x32xf32>
    %c56 = arith.constant 56 : index
    %c0_23 = arith.constant 0 : index
    %47 = vector.load %arg5[%c56, %c0_23] : memref<64x128xf32, #tpu.memory_space<vmem>>, vector<1x32xf32>
    %48 = arith.truncf %43 : vector<8x32xf32> to vector<8x32xbf16>
    %cst_24 = arith.constant dense<0.000000e+00> : vector<8x32xf32>
    %49 = tpu.matmul %48, %44, %cst_24 {dimension_numbers = #tpu.dot_dimension_numbers<[1], [0], [0], [1], [0, 0, 1, 1], [], []>} : vector<8x32xbf16>, vector<32x32xbf16>, vector<8x32xf32> -> vector<8x32xf32>
    %50 = vector.broadcast %45 : vector<1x32xf32> to vector<8x32xf32>
    %51 = arith.addf %49, %50 : vector<8x32xf32>
    %52 = vector.shape_cast %46 : vector<8x32xf32> to vector<8x1x32xf32>
    %53 = vector.shape_cast %51 : vector<8x32xf32> to vector<1x8x32xf32>
    %54 = vector.broadcast %52 : vector<8x1x32xf32> to vector<8x8x32xf32>
    %55 = vector.broadcast %53 : vector<1x8x32xf32> to vector<8x8x32xf32>
    %56 = arith.addf %54, %55 : vector<8x8x32xf32>
    %57 = math.tanh %56 : vector<8x8x32xf32>
    %58 = vector.shape_cast %47 : vector<1x32xf32> to vector<1x1x32xf32>
    %59 = vector.broadcast %58 : vector<1x1x32xf32> to vector<8x8x32xf32>
    %60 = arith.mulf %57, %59 : vector<8x8x32xf32>
    %cst_25 = arith.constant dense<0.000000e+00> : vector<8x8xf32>
    %61 = vector.multi_reduction <add>, %60, %cst_25 [2] : vector<8x8x32xf32> to vector<8x8xf32>
    %cst_26 = arith.constant dense<0xFF800000> : vector<8xf32>
    %62 = vector.multi_reduction <maximumf>, %61, %cst_26 [1] : vector<8x8xf32> to vector<8xf32>
    %63 = vector.shape_cast %62 : vector<8xf32> to vector<8x1xf32>
    %64 = vector.broadcast %63 : vector<8x1xf32> to vector<8x8xf32>
    %65 = arith.subf %61, %64 : vector<8x8xf32>
    %66 = math.exp %65 : vector<8x8xf32>
    %cst_27 = arith.constant dense<0.000000e+00> : vector<8xf32>
    %67 = vector.multi_reduction <add>, %66, %cst_27 [1] : vector<8x8xf32> to vector<8xf32>
    %68 = vector.shape_cast %67 : vector<8xf32> to vector<8x1xf32>
    %69 = tpu.reciprocal %68 {approx = true} : vector<8x1xf32> -> vector<8x1xf32>
    %70 = vector.broadcast %69 : vector<8x1xf32> to vector<8x8xf32>
    %71 = arith.mulf %66, %70 : vector<8x8xf32>
    %72 = arith.truncf %71 : vector<8x8xf32> to vector<8x8xbf16>
    %cst_28 = arith.constant dense<0.000000e+00> : vector<8x32xf32>
    %73 = tpu.matmul %72, %48, %cst_28 {dimension_numbers = #tpu.dot_dimension_numbers<[1], [0], [0], [1], [0, 0, 1, 1], [], []>} : vector<8x8xbf16>, vector<8x32xbf16>, vector<8x32xf32> -> vector<8x32xf32>
    %74 = tpu.concatenate %0, %42, %73 in 1 : vector<8x32xf32>, vector<8x32xf32>, vector<8x32xf32> -> vector<8x96xf32>
    %75 = arith.truncf %74 : vector<8x96xf32> to vector<8x96xbf16>
    %c128 = arith.constant 128 : index
    %c0_29 = arith.constant 0 : index
    %76 = vector.load %arg4[%c128, %c0_29] : memref<416x128xbf16, #tpu.memory_space<vmem>>, vector<96x96xbf16>
    %cst_30 = arith.constant dense<0.000000e+00> : vector<8x96xf32>
    %77 = tpu.matmul %75, %76, %cst_30 {dimension_numbers = #tpu.dot_dimension_numbers<[1], [0], [0], [1], [0, 0, 1, 1], [], []>} : vector<8x96xbf16>, vector<96x96xbf16>, vector<8x96xf32> -> vector<8x96xf32>
    %c24 = arith.constant 24 : index
    %c0_31 = arith.constant 0 : index
    %78 = vector.load %arg5[%c24, %c0_31] : memref<64x128xf32, #tpu.memory_space<vmem>>, vector<1x96xf32>
    %79 = vector.broadcast %78 : vector<1x96xf32> to vector<8x96xf32>
    %80 = arith.addf %77, %79 : vector<8x96xf32>
    %81 = arith.truncf %80 : vector<8x96xf32> to vector<8x96xbf16>
    %c224 = arith.constant 224 : index
    %c0_32 = arith.constant 0 : index
    %82 = vector.load %arg4[%c224, %c0_32] : memref<416x128xbf16, #tpu.memory_space<vmem>>, vector<96x96xbf16>
    %cst_33 = arith.constant dense<0.000000e+00> : vector<8x96xf32>
    %83 = tpu.matmul %81, %82, %cst_33 {dimension_numbers = #tpu.dot_dimension_numbers<[1], [0], [0], [1], [0, 0, 1, 1], [], []>} : vector<8x96xbf16>, vector<96x96xbf16>, vector<8x96xf32> -> vector<8x96xf32>
    %c32_34 = arith.constant 32 : index
    %c0_35 = arith.constant 0 : index
    %84 = vector.load %arg5[%c32_34, %c0_35] : memref<64x128xf32, #tpu.memory_space<vmem>>, vector<1x96xf32>
    %85 = vector.broadcast %84 : vector<1x96xf32> to vector<8x96xf32>
    %86 = arith.addf %83, %85 : vector<8x96xf32>
    %87 = arith.negf %86 : vector<8x96xf32>
    %88 = math.exp %87 : vector<8x96xf32>
    %cst_36 = arith.constant 1.000000e+00 : f32
    %89 = vector.broadcast %cst_36 : f32 to vector<8x96xf32>
    %90 = arith.addf %89, %88 : vector<8x96xf32>
    %91 = arith.divf %89, %90 : vector<8x96xf32>
    %92 = arith.mulf %91, %80 : vector<8x96xf32>
    %93 = arith.truncf %92 : vector<8x96xf32> to vector<8x96xbf16>
    %c320 = arith.constant 320 : index
    %c0_37 = arith.constant 0 : index
    %94 = vector.load %arg4[%c320, %c0_37] : memref<416x128xbf16, #tpu.memory_space<vmem>>, vector<96x32xbf16>
    %cst_38 = arith.constant dense<0.000000e+00> : vector<8x32xf32>
    %95 = tpu.matmul %93, %94, %cst_38 {dimension_numbers = #tpu.dot_dimension_numbers<[1], [0], [0], [1], [0, 0, 1, 1], [], []>} : vector<8x96xbf16>, vector<96x32xbf16>, vector<8x32xf32> -> vector<8x32xf32>
    %c40 = arith.constant 40 : index
    %c0_39 = arith.constant 0 : index
    %96 = vector.load %arg5[%c40, %c0_39] : memref<64x128xf32, #tpu.memory_space<vmem>>, vector<1x32xf32>
    %97 = vector.broadcast %96 : vector<1x32xf32> to vector<8x32xf32>
    %98 = arith.addf %95, %97 : vector<8x32xf32>
    %c0_40 = arith.constant 0 : index
    %c0_41 = arith.constant 0 : index
    %99 = vector.load %arg6[%c0_40, %c0_41] : memref<8x32xf32, #tpu.memory_space<vmem>>, vector<8x32xf32>
    tpu.vector_store %arg6[%c0_40, %c0_41], %98 {strides = array<i32>} : memref<8x32xf32, #tpu.memory_space<vmem>>, vector<8x32xf32>,
    return
  }
}

</mosaic_0001>

<bundles_post_ra>
// kernel: tpu_custom_call.1
= control target key start
LH: loop header
LB: loop body
LE: loop exit
PB: predicated region body
PF: predicated region fallthrough
CT: control target
= control target key end

     0   :  { %11 = vsyncpa [#allocation3], 0  ;;  %s3639_s0 = inlined_call_operand.vmem [shape: f32[8,32], index: 0, kind: input, shape index: {}]   ;;  %s3640_s1 = inlined_call_operand.vmem [shape: f32[1,32], index: 1, kind: input, shape index: {}]   ;;  %s3641_s2 = inlined_call_operand.vmem [shape: f32[36,32], index: 2, kind: input, shape index: {}]   ;;  %s3642_s3 = inlined_call_operand.hbm [shape: f32[8,32], index: 3, kind: input, shape index: {}]   ;;  %s3643_s4 = inlined_call_operand.hbm [shape: bf16[416,128], index: 4, kind: input, shape index: {}]   ;;  %s3644_s5 = inlined_call_operand.vmem [shape: f32[64,128], index: 5, kind: input, shape index: {}]   ;;  %s3645_s6 = inlined_call_operand.hbm [shape: f32[8,32], index: 6, kind: output, shape index: {}]  }
   0x1   :  { %12 = vsyncpa [#allocation6], 0 }
   0x2   :  { %13 = vsyncpa [#allocation4], 0  ;;  %s25_s23 = sshll.u32 %s3642_s3, 4  ;;  %s2383_s24 = smov [#allocation2]   ;;  %s26_s23 = int_to_ptr.hbm [resolvable:$true] %s25_s23 }
   0x3   :  { %s27_s25 = sshll.u32 %s2383_s24, 4  ;;  %s35_s28 = sshll.u32 %s3643_s4, 4  ;;  %s28_s25 = int_to_ptr.vmem [resolvable:$true] %s27_s25  ;;  %s36_s28 = int_to_ptr.hbm [resolvable:$true] %s35_s28 }
   0x4   :  { %30 = dma.hbm_to_vmem [thread:$0]  %s26_s23, 128, %s28_s25, [#allocation3]  }
   0x5   :  { %s2384_s29 = smov [#allocation5]   ;;  %s2385_s7 = smov 64  }
   0x6   :  { %s37_s30 = sshll.u32 %s2384_s29, 4  ;;  %s2386_s8 = smov 4   ;;  %s38_s30 = int_to_ptr.vmem [resolvable:$true] %s37_s30 }
   0x7   :  { %43 = dma.hbm_to_vmem [thread:$0]  %s36_s28, 3328, %s38_s30, [#allocation6], %s2385_s7, %s2385_s7, %s2386_s8  }
   0x8   :  { %2377 = dma.done.wait [#allocation3], 128  }
   0x9   :  { %2378 = vsyncadd [#allocation3], 4294967168 }
   0xa   :  { %2379 = dma.done.wait [#allocation6], 3328  }
   0xb   :  { %2380 = vsyncadd [#allocation6], 4294963968  ;;  %v2061_v0 = vld [vmem:[#allocation5 + $0x18] sm:$0xff]  ;;  %v2065_v1 = vld [vmem:[#allocation5 + $0x28] sm:$0xff]  ;;  %vm76_vm0 = vcmask 261120   ;;  %s2387_s22 = smov 32  }
   0xc   :  { %v2060_v2 = vld [vmem:[#allocation5 + $0x10] sm:$0xff]  ;;  %v2063_v3 = vld [vmem:[#allocation5 + $0x8] sm:$0xff]  ;;  %v2064_v4 = vld [vmem:[#allocation5 + $0x20] sm:$0xff]  ;;  %86 = vmatpush.bf16.msra.mxu0 %v2061_v0  ;;  %168 = vmatpush.bf16.msra.mxu2 %v2065_v1  ;;  %vm342_vm1 = vcmask 257024   ;;  %s2388_s30 = smov 96   ;;  %vm496_vm2 = vcmask 130112  }
   0xd   :  { %v57_v5 = vld [vmem:[%s3640_s1] sm:$0x1]  ;;  %v127_v7 = vld [vmem:[%s3641_s2 + $0x8] sm:$0xff]  ;;  %119 = vmatpush.bf16.msra.mxu1 %v2063_v3  ;;  %v2066_v14 = vld [vmem:[#allocation5 + $0x30] sm:$0xff]  ;;  %vm500_vm3 = vcmask 195712   ;;  %vm504_vm4 = vcmask 261312  }
   0xe   :  { %v126_v6 = vld [vmem:[%s3641_s2] sm:$0xff]  ;;  %v2062_v9 = vld [vmem:[#allocation5] sm:$0xff]  ;;  %v58_v11 = vpack.c.bf16 %v57_v5, %v57_v5  ;;  %v128_v15 = vld [vmem:[%s3641_s2 + $0x10] sm:$0xff]  ;;  %vm508_vm5 = vcmask 326912   ;;  %vm573_vm6 = vcmask 1041409   ;;  %vm575_vm7 = vcmask 1042434  }
   0xf   :  { %v2067_v8 = vld [vmem:[#allocation5 + $0x38] sm:$0xff]  ;;  %v2446_v12 = vpack.c.bf16 %v127_v7, %v126_v6  ;;  %v129_v16 = vld [vmem:[%s3641_s2 + $0x18] sm:$0xff]  ;;  %v2483_v28 = vld [vmem:[%s3644_s5 + $0x8] ss:$0 sm:$0xff]  ;;  %vm577_vm8 = vcmask 1043459   ;;  %vm579_vm9 = vcmask 1044484  }
  0x10   :  { %v55_v10 = vld [vmem:[%s3639_s0] sm:$0xff]  ;;  %87 = vmatpush.bf16.msra.mxu0 %v2060_v2  ;;  %169 = vmatpush.bf16.msra.mxu2 %v2064_v4  ;;  %v2458_v18 = vpack.c.bf16 %v129_v16, %v128_v15  ;;  %v2098_v22 = vld [vmem:[%s3644_s5 + $0x38] ss:$0 sm:$0xff]  ;;  %v2099_v44 = vld [vmem:[%s3644_s5 + $0x10] ss:$0 sm:$0xff]  ;;  %vm581_vm10 = vcmask 1045509  }
  0x11   :  { %3672 = vst [vmem:[#allocation11_spill] sm:$0xff] %v2446_v12  ;;  %v56_v13 = vpack.c.bf16 %v55_v10, %v55_v10  ;;  %120 = vmatpush.bf16.msra.mxu1 %v2062_v9  ;;  %v1337_v17 = vld [vmem:[#allocation2] sm:$0xff]  ;;  %1396 = vrot.lane.b32.xlu0 %v2098_v22, %s2387_s22  ;;  %v2510_v49 = vld [vmem:[%s3644_s5 + $0x30] ss:$0 sm:$0xff]  ;;  %vm583_vm11 = vcmask 1046534   ;;  %vm585_vm12 = vcmask 1047559  }
  0x12   :  { %3673 = vst [vmem:[#allocation12_spill] sm:$0xff] %v2458_v18  ;;  %v2460_v19 = vpack.c.bf16 %v1337_v17, %v1337_v17  ;;  %v130_v20 = vld [vmem:[%s3641_s2 + $0x20] sm:$0xf]  ;;  %vm588_vm13 = vcmask 293888   ;;  %vm1487_vm14 = vcmask 64512   ;;  %vm1321_vm15 = vcmask 1041408  }
  0x13   :  { %1952 = vmatmul.msk.bf16.vlgmr.msra.gmra.mxu0 %vm76_vm0, %v58_v11  ;;  %1970 = vmatmul.msk.bf16.vlgmr.msra.gmra.mxu2 %vm76_vm0, %v2446_v12  ;;  %v2469_v21 = vpack.c.bf16 %v130_v20, %v130_v20  ;;  %v63_v23 = vld [vmem:[%s3644_s5] sm:$0x1]  ;;  %s2390_s12 = smov [#allocation7]   ;;  %s1933_s15 = sshll.u32 %s3645_s6, 4  ;;  %s1934_s15 = int_to_ptr.hbm [resolvable:$true] %s1933_s15 }
  0x14   :  { %1367 = vmatpush.bf16.msrb.mxu0 %v2067_v8  ;;  %1961 = vmatmul.msk.bf16.vlgmr.msra.gmra.mxu1 %vm76_vm0, %v56_v13  ;;  %3674 = vst [vmem:[#allocation13_spill] sm:$0xff] %v2460_v19  ;;  %s1931_s13 = sshll.u32 %s2390_s12, 4  ;;  %s1932_s13 = int_to_ptr.vmem [resolvable:$true] %s1931_s13 }
  0x15   :  { %3675 = vst [vmem:[#allocation14_spill] sm:$0xff] %v2469_v21 }
  0x18   :  { %1368 = vmatpush.bf16.msrb.mxu0 %v2066_v14 }
  0x23   :  { %1971 = vmatmul.msk.bf16.gmra.mxu2 %vm76_vm0, %v2458_v18  ;;  %1982 = vmatmul.msk.bf16.vlgmr.msrb.gmra.mxu0 %vm76_vm0, %v2460_v19 }
  0x33   :  { %1972 = vmatmul.msk.bf16.gmra.mxu2 %vm76_vm0, %v2469_v21 }
  0x90   :  { %v89_v24 = vpop.f32.mrf.mxu0 }
  0x91   :  { %v90_v25 = vadd.f32 %v89_v24, %v63_v23  ;;  %v122_v26 = vpop.f32.mrf.mxu1 }
  0x93   :  { %v97_v27 = vperm.slane %v90_v25, 0 }
  0x95   :  { %v123_v29 = vadd.f32 %v122_v26, %v97_v27 }
  0x96   :  { %v171_v30 = vpop.f32.mrf.mxu2 }
  0x97   :  { %v2486_v31 = vadd.f32 %v2483_v28, %v171_v30  ;;  %v2488_v32 = vperm.slane %v123_v29, 0  ;;  %v188_v33 = vrot.slane %v123_v29, 3  ;;  %v190_v34 = vrot.slane %v123_v29, 5 }
  0x98   :  { %v91_v35 = vpop.f32.mrf.mxu0  ;;  %v189_v36 = vrot.slane %v123_v29, 4  ;;  %v187_v46 = vrot.slane %v123_v29, 2  ;;  %v192_v47 = vrot.slane %v123_v29, 7  ;;  %v186_v52 = vrot.slane %v123_v29, 1 }
  0x99   :  { %v209_v37 = vadd.f32 %v2488_v32, %v2486_v31  ;;  %v2492_v38 = vperm.slane %v188_v33, 0  ;;  %v2494_v39 = vperm.slane %v190_v34, 0  ;;  %v124_v40 = vpop.f32.mrf.mxu1  ;;  %v191_v62 = vrot.slane %v123_v29, 6 }
  0x9a   :  { %v2496_v41 = vperm.slane %v189_v36, 0  ;;  %v2515_v55 = vperm.slane %v187_v46, 0  ;;  %v2517_v56 = vperm.slane %v192_v47, 0  ;;  %v2527_v1 = vperm.slane %v186_v52, 0 }
  0x9b   :  { %2104 = vtanh.f32 %v209_v37  ;;  %v224_v42 = vadd.f32 %v2492_v38, %v2486_v31  ;;  %v234_v43 = vadd.f32 %v2494_v39, %v2486_v31  ;;  %v2531_v7 = vperm.slane %v191_v62, 0 }
  0x9c   :  { %v229_v45 = vadd.f32 %v2496_v41, %v2486_v31  ;;  %v244_v0 = vadd.f32 %v2517_v56, %v2486_v31  ;;  %v214_v8 = vadd.f32 %v2527_v1, %v2486_v31  ;;  %v219_v23 = vadd.f32 %v2515_v55, %v2486_v31 }
  0x9d   :  { %2106 = vtanh.f32 %v224_v42 }
  0x9e   :  { %v173_v48 = vpop.f32.mrf.mxu2  ;;  %2108 = vtanh.f32 %v234_v43 }
  0x9f   :  { %v2513_v50 = vadd.f32 %v2483_v28, %v173_v48  ;;  %2110 = vtanh.f32 %v229_v45 }
  0xa0   :  { %v1370_v51 = vpop.f32.mrf.mxu0 }
  0xa1   :  { %v2105_v53 = vpop.eup %2104  ;;  %v1371_v54 = vadd.f32 %v2099_v44, %v1370_v51  ;;  %v220_v59 = vadd.f32 %v2515_v55, %v2513_v50  ;;  %v240_v10 = vadd.f32 %v2531_v7, %v2513_v50  ;;  %v210_v11 = vadd.f32 %v2488_v32, %v2513_v50 }
  0xa2   :  { %v290_v57 = vmul.f32 %v2105_v53, %v2510_v49  ;;  %v215_v14 = vadd.f32 %v2527_v1, %v2513_v50  ;;  %v235_v17 = vadd.f32 %v2494_v39, %v2513_v50  ;;  %v245_v36 = vadd.f32 %v2517_v56, %v2513_v50 }
  0xa3   :  { %v2107_v58 = vpop.eup %2106  ;;  %1375 = vrot.lane.b32.xlu0 %v1371_v54, %s2387_s22  ;;  %2112 = vtanh.f32 %v220_v59 }
  0xa4   :  { %v330_v60 = vsel %vm76_vm0, %v290_v57, 0.0  ;;  %v305_v61 = vmul.f32 %v2107_v58, %v2510_v49  ;;  %v2109_v63 = vpop.eup %2108  ;;  %2114 = vtanh.f32 %v244_v0 }
  0xa5   :  { %331 = vadd.xlane.f32.xlu1 %v330_v60  ;;  %v2111_v4 = vpop.eup %2110  ;;  %v315_v6 = vmul.f32 %v2109_v63, %v2510_v49  ;;  %2116 = vtanh.f32 %v214_v8 }
  0xa6   :  { %v176_v2 = vpop.f32.mrf.mxu2  ;;  %v376_v3 = vsel %vm76_vm0, %v305_v61, 0.0  ;;  %v310_v9 = vmul.f32 %v2111_v4, %v2510_v49  ;;  %2118 = vtanh.f32 %v240_v10 }
  0xa7   :  { %377 = vadd.xlane.f32.xlu2 %v376_v3  ;;  %v406_v13 = vsel %vm76_vm0, %v315_v6, 0.0  ;;  %v2544_v16 = vadd.f32 %v2483_v28, %v176_v2  ;;  %2120 = vtanh.f32 %v210_v11 }
  0xa8   :  { %v1372_v5 = vpop.f32.mrf.mxu0  ;;  %v391_v22 = vsel %vm76_vm0, %v310_v9, 0.0  ;;  %2122 = vtanh.f32 %v215_v14 }
  0xa9   :  { %v2113_v15 = vpop.eup %2112  ;;  %v211_v27 = vadd.f32 %v2488_v32, %v2544_v16  ;;  %2124 = vtanh.f32 %v235_v17  ;;  %v221_v44 = vadd.f32 %v2515_v55, %v2544_v16  ;;  %v226_v48 = vadd.f32 %v2492_v38, %v2544_v16 }
  0xaa   :  { %v2115_v24 = vpop.eup %2114  ;;  %v301_v26 = vmul.f32 %v2113_v15, %v2510_v49  ;;  %2126 = vtanh.f32 %v219_v23  ;;  %v246_v6 = vadd.f32 %v2517_v56, %v2544_v16 }
  0xab   :  { %v325_v33 = vmul.f32 %v2115_v24, %v2510_v49  ;;  %v2564_v35 = vpop.eup %2116 }
  0xac   :  { %v2119_v37 = vpop.eup %2118  ;;  %v364_v40 = vsel %vm76_vm0, %v301_v26, 0.0 }
  0xad   :  { %407 = vadd.xlane.f32.xlu1 %v406_v13  ;;  %v2121_v43 = vpop.eup %2120  ;;  %v436_v47 = vsel %vm76_vm0, %v325_v33, 0.0  ;;  %v321_v54 = vmul.f32 %v2119_v37, %v2510_v49 }
  0xae   :  { %v178_v20 = vpop.f32.mrf.mxu2  ;;  %v2123_v45 = vpop.eup %2122  ;;  %v291_v58 = vmul.f32 %v2121_v43, %v2510_v49 }
  0xaf   :  { %v2552_v25 = vadd.f32 %v2483_v28, %v178_v20  ;;  %392 = vadd.xlane.f32.xlu2 %v391_v22  ;;  %v2576_v51 = vpop.eup %2124  ;;  %v424_v5 = vsel %vm76_vm0, %v321_v54, 0.0 }
  0xb0   :  { %v2579_v53 = vpop.eup %2126  ;;  %v333_v13 = vsel %vm76_vm0, %v291_v58, 0.0 }
  0xb1   :  { %v232_v29 = vadd.f32 %v2496_v41, %v2552_v25  ;;  %v212_v30 = vadd.f32 %v2488_v32, %v2552_v25  ;;  %v227_v34 = vadd.f32 %v2492_v38, %v2552_v25  ;;  %v242_v42 = vadd.f32 %v2531_v7, %v2552_v25 }
  0xb2   :  { %v247_v63 = vadd.f32 %v2517_v56, %v2552_v25  ;;  %v217_v17 = vadd.f32 %v2527_v1, %v2552_v25 }
  0xb3   :  { %2128 = vtanh.f32 %v232_v29 }
  0xb4   :  { %2130 = vtanh.f32 %v212_v30  ;;  %v237_v30 = vadd.f32 %v2494_v39, %v2552_v25 }
  0xb5   :  { %365 = vadd.xlane.f32.xlu1 %v364_v40  ;;  %2132 = vtanh.f32 %v211_v27  ;;  %v222_v27 = vadd.f32 %v2515_v55, %v2552_v25 }
  0xb6   :  { %v181_v46 = vpop.f32.mrf.mxu2  ;;  %2134 = vtanh.f32 %v227_v34  ;;  %v296_v34 = vmul.f32 %v2123_v45, %v2510_v49 }
  0xb7   :  { %v182_v52 = vadd.f32 %v2483_v28, %v181_v46  ;;  %437 = vadd.xlane.f32.xlu2 %v436_v47  ;;  %2136 = vtanh.f32 %v245_v36  ;;  %v216_v47 = vadd.f32 %v2527_v1, %v2544_v16 }
  0xb8   :  { %2138 = vtanh.f32 %v242_v42 }
  0xb9   :  { %v2129_v57 = vpop.eup %2128  ;;  %2140 = vtanh.f32 %v221_v44  ;;  %v213_v59 = vadd.f32 %v2488_v32, %v182_v52  ;;  %v223_v60 = vadd.f32 %v2515_v55, %v182_v52  ;;  %v238_v28 = vadd.f32 %v2494_v39, %v182_v52 }
  0xba   :  { %v2131_v61 = vpop.eup %2130  ;;  %2142 = vtanh.f32 %v226_v48  ;;  %v2586_v62 = vmul.f32 %v2129_v57, %v2510_v49  ;;  %v243_v3 = vadd.f32 %v2531_v7, %v182_v52  ;;  %v218_v10 = vadd.f32 %v2527_v1, %v182_v52 }
  0xbb   :  { %v2133_v0 = vpop.eup %2132  ;;  %v2592_v2 = vmul.f32 %v2131_v61, %v2510_v49  ;;  %2144 = vtanh.f32 %v213_v59  ;;  %v233_v23 = vadd.f32 %v2496_v41, %v182_v52  ;;  %v228_v37 = vadd.f32 %v2492_v38, %v182_v52 }
  0xbc   :  { %v2135_v4 = vpop.eup %2134  ;;  %2146 = vtanh.f32 %v223_v60  ;;  %v292_v26 = vmul.f32 %v2133_v0, %v2510_v49  ;;  %v248_v43 = vadd.f32 %v2517_v56, %v182_v52  ;;  %v349_v57 = vsel %vm76_vm0, %v296_v34, 0.0 }
  0xbd   :  { %v2137_v8 = vpop.eup %2136  ;;  %425 = vadd.xlane.f32.xlu1 %v424_v5  ;;  %v2599_v9 = vmul.f32 %v2135_v4, %v2510_v49  ;;  %2148 = vtanh.f32 %v238_v28  ;;  %v295_v28 = vmul.f32 %v2564_v35, %v2510_v49  ;;  %v316_v5 = vmul.f32 %v2576_v51, %v2510_v49 }
  0xbe   :  { %v2139_v11 = vpop.eup %2138  ;;  %v2604_v14 = vmul.f32 %v2137_v8, %v2510_v49  ;;  %2150 = vtanh.f32 %v247_v63  ;;  %v183_v15 = vpop.f32.mrf.mxu2  ;;  %v336_v46 = vsel %vm76_vm0, %v292_v26, 0.0  ;;  %v239_v35 = vadd.f32 %v2531_v7, %v2486_v31 }
  0xbf   :  { %v2141_v20 = vpop.eup %2140  ;;  %334 = vadd.xlane.f32.xlu2 %v333_v13  ;;  %v2609_v22 = vmul.f32 %v2139_v11, %v2510_v49  ;;  %2152 = vtanh.f32 %v243_v3  ;;  %v409_v26 = vsel %vm76_vm0, %v316_v5, 0.0  ;;  %v400_v5 = vsel %vm76_vm0, %v2586_v62, 0.0 }
  0xc0   :  { %v2612_v24 = vpop.eup %2142  ;;  %2154 = vtanh.f32 %v246_v6  ;;  %v302_v61 = vmul.f32 %v2141_v20, %v2510_v49  ;;  %v241_v6 = vadd.f32 %v2531_v7, %v2544_v16  ;;  %v385_v62 = vsel %vm76_vm0, %v2599_v9, 0.0 }
  0xc1   :  { %v2145_v29 = vpop.eup %2144  ;;  %2156 = vtanh.f32 %v218_v10 }
  0xc2   :  { %v2147_v33 = vpop.eup %2146  ;;  %v2621_v36 = vmul.f32 %v2145_v29, %v2510_v49  ;;  %2158 = vtanh.f32 %v217_v17  ;;  %v367_v15 = vsel %vm76_vm0, %v302_v61, 0.0  ;;  %v346_v17 = vsel %vm76_vm0, %v295_v28, 0.0 }
  0xc3   :  { %v2149_v40 = vpop.eup %2148  ;;  %v2625_v42 = vmul.f32 %v2147_v33, %v2510_v49  ;;  %2160 = vtanh.f32 %v233_v23  ;;  %v236_v23 = vadd.f32 %v2494_v39, %v2544_v16  ;;  %v300_v33 = vmul.f32 %v2579_v53, %v2510_v49 }
  0xc4   :  { %v2151_v44 = vpop.eup %2150  ;;  %v2630_v25 = vmul.f32 %v2149_v40, %v2510_v49  ;;  %2162 = vtanh.f32 %v222_v27  ;;  %v225_v40 = vadd.f32 %v2492_v38, %v2513_v50 }
  0xc5   :  { %v2153_v45 = vpop.eup %2152  ;;  %337 = vadd.xlane.f32.xlu1 %v336_v46  ;;  %v2635_v48 = vmul.f32 %v2151_v44, %v2510_v49  ;;  %2164 = vtanh.f32 %v237_v30  ;;  %v307_v30 = vmul.f32 %v2612_v24, %v2510_v49  ;;  %v361_v46 = vsel %vm76_vm0, %v300_v33, 0.0 }
  0xc6   :  { %v2155_v54 = vpop.eup %2154  ;;  %v2639_v52 = vmul.f32 %v2153_v45, %v2510_v49  ;;  %2166 = vtanh.f32 %v228_v37  ;;  %v418_v9 = vsel %vm342_vm1, %v2630_v25, 0.0  ;;  %v2730_v25 = vpop.permute.xlu0 %1396 }
  0xc7   :  { %v2157_v58 = vpop.eup %2156  ;;  %350 = vadd.xlane.f32.xlu2 %v349_v57  ;;  %v2642_v59 = vmul.f32 %v2155_v54, %v2510_v49  ;;  %2168 = vtanh.f32 %v248_v43  ;;  %v382_v44 = vsel %vm76_vm0, %v307_v30, 0.0 }
  0xc8   :  { %v2159_v60 = vpop.eup %2158  ;;  %v2648_v63 = vmul.f32 %v2157_v58, %v2510_v49  ;;  %2170 = vtanh.f32 %v216_v47  ;;  %v230_v58 = vadd.f32 %v2496_v41, %v2513_v50  ;;  %v339_v50 = vsel %vm76_vm0, %v2592_v2, 0.0 }
  0xc9   :  { %v2161_v0 = vpop.eup %2160  ;;  %v2651_v3 = vmul.f32 %v2159_v60, %v2510_v49  ;;  %2172 = vtanh.f32 %v241_v6  ;;  %v373_v2 = vsel %vm342_vm1, %v2625_v42, 0.0  ;;  %v445_v42 = vsel %vm76_vm0, %v2635_v48, 0.0 }
  0xca   :  { %v2163_v4 = vpop.eup %2162  ;;  %v2658_v8 = vmul.f32 %v2161_v0, %v2510_v49  ;;  %2174 = vtanh.f32 %v239_v35 }
  0xcb   :  { %v2165_v10 = vpop.eup %2164  ;;  %v2663_v11 = vmul.f32 %v2163_v4, %v2510_v49  ;;  %2176 = vtanh.f32 %v236_v23 }
  0xcc   :  { %v2167_v13 = vpop.eup %2166  ;;  %v2668_v51 = vmul.f32 %v2165_v10, %v2510_v49  ;;  %2178 = vtanh.f32 %v225_v40  ;;  %v403_v48 = vsel %vm342_vm1, %v2658_v8, 0.0 }
  0xcd   :  { %v2169_v20 = vpop.eup %2168  ;;  %368 = vadd.xlane.f32.xlu1 %v367_v15  ;;  %347 = vadd.xlane.f32.xlu0 %v346_v17  ;;  %v2673_v31 = vmul.f32 %v2167_v13, %v2510_v49  ;;  %2180 = vtanh.f32 %v230_v58  ;;  %v231_v13 = vadd.f32 %v2496_v41, %v2544_v16  ;;  %v343_v15 = vsel %vm342_vm1, %v2621_v36, 0.0 }
  0xce   :  { %v329_v27 = vmul.f32 %v2169_v20, %v2510_v49  ;;  %v2171_v29 = vpop.eup %2170  ;;  %v439_v20 = vsel %vm76_vm0, %v2604_v14, 0.0  ;;  %v430_v16 = vsel %vm76_vm0, %v2609_v22, 0.0  ;;  %v433_v14 = vsel %vm342_vm1, %v2639_v52, 0.0 }
  0xcf   :  { %410 = vadd.xlane.f32.xlu2 %v409_v26  ;;  %v297_v37 = vmul.f32 %v2171_v29, %v2510_v49  ;;  %v2173_v43 = vpop.eup %2172  ;;  %2182 = vtanh.f32 %v231_v13  ;;  %v442_v22 = vsel %vm76_vm0, %v2642_v59, 0.0  ;;  %v370_v52 = vsel %vm76_vm0, %v2663_v11, 0.0 }
  0xd0   :  { %v2682_v34 = vsel %vm342_vm1, %v329_v27, 0.0  ;;  %v2175_v45 = vpop.eup %2174  ;;  %v322_v47 = vmul.f32 %v2173_v43, %v2510_v49  ;;  %v355_v27 = vsel %vm76_vm0, %v2651_v3, 0.0  ;;  %v415_v8 = vsel %vm76_vm0, %v2668_v51, 0.0 }
  0xd1   :  { %v352_v24 = vsel %vm76_vm0, %v297_v37, 0.0  ;;  %v2177_v53 = vpop.eup %2176  ;;  %v320_v54 = vmul.f32 %v2175_v45, %v2510_v49  ;;  %v388_v51 = vsel %vm342_vm1, %v2673_v31, 0.0 }
  0xd2   :  { %v317_v57 = vmul.f32 %v2177_v53, %v2510_v49  ;;  %v427_v60 = vsel %vm76_vm0, %v322_v47, 0.0  ;;  %v2179_v28 = vpop.eup %2178 }
  0xd3   :  { %v421_v61 = vsel %vm76_vm0, %v320_v54, 0.0  ;;  %v306_v4 = vmul.f32 %v2179_v28, %v2510_v49  ;;  %v2181_v10 = vpop.eup %2180 }
  0xd4   :  { %v412_v0 = vsel %vm76_vm0, %v317_v57, 0.0  ;;  %v311_v35 = vmul.f32 %v2181_v10, %v2510_v49 }
  0xd5   :  { %383 = vadd.xlane.f32.xlu1 %v382_v44  ;;  %362 = vadd.xlane.f32.xlu0 %v361_v46  ;;  %v379_v6 = vsel %vm76_vm0, %v306_v4, 0.0  ;;  %v2183_v23 = vpop.eup %2182 }
  0xd6   :  { %v394_v17 = vsel %vm76_vm0, %v311_v35, 0.0  ;;  %v312_v36 = vmul.f32 %v2183_v23, %v2510_v49  ;;  %v358_v49 = vsel %vm342_vm1, %v2648_v63, 0.0  ;;  %vm1676_vm1 = vcmask 1043456  }
  0xd7   :  { %353 = vadd.xlane.f32.xlu2 %v352_v24 }
  0xd8   :  { %v397_v26 = vsel %vm76_vm0, %v312_v36, 0.0 }
  0xdd   :  { %428 = vadd.xlane.f32.xlu1 %v427_v60  ;;  %422 = vadd.xlane.f32.xlu0 %v421_v61 }
  0xdf   :  { %413 = vadd.xlane.f32.xlu2 %v412_v0 }
  0xe5   :  { %401 = vadd.xlane.f32.xlu1 %v400_v5  ;;  %380 = vadd.xlane.f32.xlu0 %v379_v6 }
  0xe7   :  { %340 = vadd.xlane.f32.xlu2 %v339_v50 }
  0xed   :  { %344 = vadd.xlane.f32.xlu1 %v343_v15  ;;  %395 = vadd.xlane.f32.xlu0 %v394_v17 }
  0xef   :  { %386 = vadd.xlane.f32.xlu2 %v385_v62 }
  0xf5   :  { %374 = vadd.xlane.f32.xlu1 %v373_v2  ;;  %440 = vadd.xlane.f32.xlu0 %v439_v20 }
  0xf7   :  { %431 = vadd.xlane.f32.xlu2 %v430_v16 }
  0xfd   :  { %419 = vadd.xlane.f32.xlu1 %v418_v9  ;;  %398 = vadd.xlane.f32.xlu0 %v397_v26 }
  0xff   :  { %446 = vadd.xlane.f32.xlu2 %v445_v42 }
 0x105   :  { %434 = vadd.xlane.f32.xlu1 %v433_v14  ;;  %443 = vadd.xlane.f32.xlu0 %v442_v22 }
 0x107   :  { %359 = vadd.xlane.f32.xlu2 %v358_v49 }
 0x10d   :  { %356 = vadd.xlane.f32.xlu0 %v355_v27 }
 0x10f   :  { %404 = vadd.xlane.f32.xlu2 %v403_v48 }
 0x115   :  { %v1376_v59 = vpop.permute.xlu0 %1375  ;;  %371 = vadd.xlane.f32.xlu0 %v370_v52  ;;  %v491_v52 = vlaneseq }
 0x116   :  { %v1378_v29 = vadd.f32 %v1376_v59, %v2488_v32  ;;  %v1380_v63 = vadd.f32 %v1376_v59, %v2515_v55  ;;  %v1379_v3 = vadd.f32 %v1376_v59, %v2527_v1  ;;  %v1381_v32 = vadd.f32 %v1376_v59, %v2492_v38 }
 0x117   :  { %v1383_v1 = vadd.f32 %v1376_v59, %v2494_v39  ;;  %v1384_v24 = vadd.f32 %v1376_v59, %v2531_v7  ;;  %v1382_v60 = vadd.f32 %v1376_v59, %v2496_v41  ;;  %v1385_v28 = vadd.f32 %v1376_v59, %v2517_v56 }
 0x118   :  { %v2739_v30 = vpop.xlane.xlu1 %331  ;;  %2184 = vtanh.f32 %v1378_v29 }
 0x119   :  { %2186 = vtanh.f32 %v1380_v63 }
 0x11a   :  { %v2742_v33 = vpop.xlane.xlu2 %377  ;;  %2188 = vtanh.f32 %v1379_v3  ;;  %v2837_v3 = vand.u32 127, %v491_v52 }
 0x11b   :  { %2190 = vtanh.f32 %v1381_v32 }
 0x11c   :  { %2192 = vtanh.f32 %v1383_v1  ;;  %v493_v1 = vperm.slane %v2739_v30, %v2837_v3 }
 0x11d   :  { %416 = vadd.xlane.f32.xlu0 %v415_v8  ;;  %2194 = vtanh.f32 %v1384_v24  ;;  %v2840_v8 = vadd.s32 4294967280, %v2837_v3 }
 0x11e   :  { %v2185_v37 = vpop.eup %2184  ;;  %2196 = vtanh.f32 %v1382_v60 }
 0x11f   :  { %v1399_v11 = vmul.f32 %v2185_v37, %v2730_v25  ;;  %v2187_v55 = vpop.eup %2186  ;;  %2198 = vtanh.f32 %v1385_v28  ;;  %v2843_v37 = vadd.s32 4294967288, %v2837_v3 }
 0x120   :  { %v2748_v40 = vpop.xlane.xlu1 %407  ;;  %v2189_v44 = vpop.eup %2188  ;;  %v1401_v46 = vmul.f32 %v2187_v55, %v2730_v25 }
 0x121   :  { %3676 = vst [vmem:[#allocation15_spill] sm:$0xff] %v2748_v40  ;;  %1415 = vrot.lane.b32.xlu1 %v1399_v11, %s2388_s30  ;;  %v1400_v38 = vmul.f32 %v2189_v44, %v2730_v25  ;;  %v2191_v39 = vpop.eup %2190  ;;  %v528_v44 = vperm.slane %v2742_v33, %v2837_v3 }
 0x122   :  { %v2752_v43 = vpop.xlane.xlu2 %392  ;;  %v2193_v47 = vpop.eup %2192  ;;  %v1402_v31 = vmul.f32 %v2191_v39, %v2730_v25 }
 0x123   :  { %v1404_v54 = vmul.f32 %v2193_v47, %v2730_v25  ;;  %v2195_v7 = vpop.eup %2194  ;;  %v537_v24 = vperm.slane %v2752_v43, %v2837_v3 }
 0x124   :  { %v1405_v61 = vmul.f32 %v2195_v7, %v2730_v25  ;;  %v2197_v4 = vpop.eup %2196 }
 0x125   :  { %389 = vadd.xlane.f32.xlu0 %v388_v51  ;;  %v1403_v5 = vmul.f32 %v2197_v4, %v2730_v25  ;;  %v2199_v10 = vpop.eup %2198 }
 0x126   :  { %v1406_v35 = vmul.f32 %v2199_v10, %v2730_v25  ;;  %v2882_v10 = vadd.s32 4294967272, %v2837_v3 }
 0x127   :  { %1419 = vrot.lane.b32.xlu2 %v1401_v46, %s2388_s30 }
 0x128   :  { %v2760_v45 = vpop.xlane.xlu1 %365 }
 0x129   :  { %1417 = vrot.lane.b32.xlu1 %v1400_v38, %s2388_s30  ;;  %v546_v38 = vperm.slane %v2748_v40, %v2837_v3  ;;  %v520_v39 = vperm.slane %v2760_v45, %v2843_v37 }
 0x12a   :  { %v2764_v53 = vpop.xlane.xlu2 %437 }
 0x12d   :  { %449 = vadd.xlane.f32.xlu0 %v2682_v34 }
 0x12f   :  { %1421 = vrot.lane.b32.xlu2 %v1402_v31, %s2388_s30 }
 0x130   :  { %v2770_v57 = vpop.xlane.xlu1 %425 }
 0x131   :  { %3677 = vst [vmem:[#allocation16_spill] sm:$0xff] %v2770_v57  ;;  %1425 = vrot.lane.b32.xlu1 %v1404_v54, %s2388_s30  ;;  %v556_v31 = vperm.slane %v2770_v57, %v2843_v37 }
 0x132   :  { %v2773_v58 = vpop.xlane.xlu2 %334 }
 0x133   :  { %v495_v32 = vperm.slane %v2773_v58, %v2843_v37 }
 0x135   :  { %v497_v54 = vsel %vm496_vm2, %v495_v32, %v493_v1 }
 0x137   :  { %1427 = vrot.lane.b32.xlu2 %v1405_v61, %s2388_s30 }
 0x138   :  { %v2781_v0 = vpop.xlane.xlu1 %337 }
 0x139   :  { %v499_v55 = vperm.slane %v2781_v0, %v2840_v8 }
 0x13a   :  { %v2778_v34 = vpop.xlane.xlu2 %350 }
 0x13b   :  { %v501_v28 = vsel %vm500_vm3, %v499_v55, %v497_v54  ;;  %v511_v4 = vperm.slane %v2778_v34, %v2843_v37  ;;  %v2894_v54 = vadd.s32 4294967264, %v2837_v3 }
 0x140   :  { %v2784_v6 = vpop.xlane.xlu0 %347  ;;  %v2789_v50 = vpop.xlane.xlu1 %368 }
 0x141   :  { %1423 = vrot.lane.b32.xlu0 %v1403_v5, %s2388_s30  ;;  %v510_v7 = vperm.slane %v2784_v6, %v2837_v3  ;;  %v522_v55 = vperm.slane %v2789_v50, %v2840_v8 }
 0x142   :  { %v2787_v41 = vpop.xlane.xlu2 %410 }
 0x143   :  { %v547_v60 = vperm.slane %v2787_v41, %v2843_v37 }
 0x145   :  { %v548_v19 = vsel %vm496_vm2, %v547_v60, %v546_v38 }
 0x148   :  { %v2792_v13 = vpop.xlane.xlu0 %362  ;;  %v2797_v15 = vpop.xlane.xlu1 %383 }
 0x149   :  { %1429 = vrot.lane.b32.xlu0 %v1406_v35, %s2388_s30  ;;  %v519_v51 = vperm.slane %v2792_v13, %v2837_v3  ;;  %v531_v18 = vperm.slane %v2797_v15, %v2840_v8 }
 0x14a   :  { %v2795_v56 = vpop.xlane.xlu2 %353 }
 0x14b   :  { %v513_v5 = vperm.slane %v2795_v56, %v2840_v8  ;;  %v521_v35 = vsel %vm496_vm2, %v520_v39, %v519_v51  ;;  %v512_v39 = vsel %vm496_vm2, %v511_v4, %v510_v7 }
 0x14d   :  { %v514_v21 = vsel %vm500_vm3, %v513_v5, %v512_v39 }
 0x150   :  { %v2799_v17 = vpop.xlane.xlu0 %422  ;;  %v2805_v20 = vpop.xlane.xlu1 %428 }
 0x151   :  { %3678 = vst [vmem:[#allocation17_spill] sm:$0xff] %v2799_v17  ;;  %v555_v52 = vperm.slane %v2799_v17, %v2837_v3  ;;  %v523_v17 = vsel %vm500_vm3, %v522_v55, %v521_v35  ;;  %v558_v40 = vperm.slane %v2805_v20, %v2840_v8 }
 0x152   :  { %v2801_v62 = vpop.xlane.xlu2 %413  ;;  %3680 = vst [vmem:[#allocation19_spill] sm:$0xff] %v2805_v20 }
 0x153   :  { %3679 = vst [vmem:[#allocation18_spill] sm:$0xff] %v2801_v62  ;;  %v549_v32 = vperm.slane %v2801_v62, %v2840_v8  ;;  %v557_v7 = vsel %vm496_vm2, %v556_v31, %v555_v52 }
 0x155   :  { %v550_v38 = vsel %vm500_vm3, %v549_v32, %v548_v19 }
 0x158   :  { %v2803_v2 = vpop.xlane.xlu0 %380  ;;  %v2813_v9 = vpop.xlane.xlu1 %401 }
 0x159   :  { %v529_v1 = vperm.slane %v2803_v2, %v2843_v37 }
 0x15a   :  { %v2807_v23 = vpop.xlane.xlu2 %340 }
 0x15b   :  { %v530_v62 = vsel %vm496_vm2, %v529_v1, %v528_v44  ;;  %v503_v5 = vperm.slane %v2807_v23, %v2882_v10  ;;  %v542_v44 = vperm.slane %v2813_v9, %v2882_v10 }
 0x160   :  { %v2809_v16 = vpop.xlane.xlu0 %395  ;;  %v2819_v14 = vpop.xlane.xlu1 %344 }
 0x161   :  { %v538_v57 = vperm.slane %v2809_v16, %v2843_v37  ;;  %v507_v55 = vperm.slane %v2819_v14, %v2894_v54 }
 0x162   :  { %v2811_v36 = vpop.xlane.xlu2 %386 }
 0x163   :  { %v533_v31 = vperm.slane %v2811_v36, %v2882_v10  ;;  %v539_v32 = vsel %vm496_vm2, %v538_v57, %v537_v24 }
 0x168   :  { %v2815_v26 = vpop.xlane.xlu0 %440  ;;  %v2825_v25 = vpop.xlane.xlu1 %374 }
 0x16a   :  { %v2817_v42 = vpop.xlane.xlu2 %431 }
 0x170   :  { %v2821_v22 = vpop.xlane.xlu0 %398  ;;  %v2833_v29 = vpop.xlane.xlu1 %419 }
 0x171   :  { %v540_v60 = vperm.slane %v2821_v22, %v2840_v8 }
 0x172   :  { %v2823_v49 = vpop.xlane.xlu2 %446 }
 0x173   :  { %v541_v1 = vsel %vm500_vm3, %v540_v60, %v539_v32 }
 0x178   :  { %v2827_v27 = vpop.xlane.xlu0 %443  ;;  %v2857_v46 = vpop.xlane.xlu1 %434 }
 0x17a   :  { %v2829_v48 = vpop.xlane.xlu2 %359 }
 0x17b   :  { %v517_v19 = vperm.slane %v2829_v48, %v2894_v54 }
 0x180   :  { %v2831_v59 = vpop.xlane.xlu0 %356 }
 0x181   :  { %v515_v47 = vperm.slane %v2831_v59, %v2882_v10 }
 0x182   :  { %v2835_v63 = vpop.xlane.xlu2 %404 }
 0x183   :  { %v516_v39 = vsel %vm504_vm4, %v515_v47, %v514_v21  ;;  %v526_v21 = vperm.slane %v2825_v25, %v2894_v54  ;;  %v532_v47 = vsel %vm500_vm3, %v531_v18, %v530_v62  ;;  %v544_v20 = vperm.slane %v2835_v63, %v2894_v54 }
 0x184   :  { %v534_v62 = vsel %vm504_vm4, %v533_v31, %v532_v47 }
 0x188   :  { %v2845_v11 = vpop.xlane.xlu0 %371 }
 0x189   :  { %v524_v12 = vperm.slane %v2845_v11, %v2882_v10 }
 0x18a   :  { %v2874_v61 = vpop.permute.xlu2 %1419 }
 0x18b   :  { %v525_v52 = vsel %vm504_vm4, %v524_v12, %v523_v17  ;;  %v505_v17 = vsel %vm504_vm4, %v503_v5, %v501_v28  ;;  %v543_v5 = vsel %vm504_vm4, %v542_v44, %v541_v1  ;;  %v560_v44 = vperm.slane %v2817_v42, %v2882_v10 }
 0x18c   :  { %v509_v18 = vsel %vm508_vm5, %v507_v55, %v505_v17  ;;  %v553_v1 = vperm.slane %v2833_v29, %v2894_v54 }
 0x190   :  { %v2898_v51 = vpop.xlane.xlu0 %416 }
 0x191   :  { %v551_v57 = vperm.slane %v2898_v51, %v2882_v10 }
 0x192   :  { %v1422_v12 = vpop.permute.xlu2 %1421 }
 0x193   :  { %v1416_v4 = vpop.permute.xlu1 %1415 }
 0x194   :  { %v1439_v35 = vsel %vm76_vm0, %v1416_v4, 0.0  ;;  %v518_v4 = vsel %vm508_vm5, %v517_v19, %v516_v39  ;;  %v565_v39 = vperm.slane %v2815_v26, %v2843_v37  ;;  %v567_v19 = vperm.slane %v2827_v27, %v2840_v8 }
 0x195   :  { %1440 = vadd.xlane.f32.xlu1 %v1439_v35  ;;  %v527_v35 = vsel %vm508_vm5, %v526_v21, %v525_v52  ;;  %v574_v28 = vsel %vm573_vm6, %v518_v4, %v509_v18  ;;  %v545_v52 = vsel %vm508_vm5, %v544_v20, %v543_v5  ;;  %v552_v21 = vsel %vm504_vm4, %v551_v57, %v550_v38 }
 0x196   :  { %v576_v55 = vsel %vm575_vm7, %v527_v35, %v574_v28  ;;  %v1448_v4 = vsel %vm76_vm0, %v1422_v12, 0.0  ;;  %v3681_v38 = vperm.slane %v2764_v53, %v2837_v3  ;;  %v562_v57 = vperm.slane %v2857_v46, %v2894_v54 }
 0x197   :  { %v554_v18 = vsel %vm508_vm5, %v553_v1, %v552_v21 }
 0x198   :  { %v2942_v24 = vpop.xlane.xlu0 %389  ;;  %v566_v35 = vsel %vm496_vm2, %v565_v39, %v3681_v38 }
 0x199   :  { %v535_v60 = vperm.slane %v2942_v24, %v2894_v54  ;;  %v568_v12 = vsel %vm500_vm3, %v567_v19, %v566_v35 }
 0x19a   :  { %v1428_v39 = vpop.permute.xlu2 %1427 }
 0x19b   :  { %v536_v31 = vsel %vm508_vm5, %v535_v60, %v534_v62  ;;  %v1418_v32 = vpop.permute.xlu1 %1417  ;;  %v559_v62 = vsel %vm500_vm3, %v558_v40, %v557_v7  ;;  %v569_v60 = vperm.slane %v2823_v49, %v2882_v10 }
 0x19c   :  { %v578_v47 = vsel %vm577_vm8, %v536_v31, %v576_v55  ;;  %v1442_v17 = vsel %vm76_vm0, %v1418_v32, 0.0  ;;  %v1457_v32 = vsel %vm76_vm0, %v1428_v39, 0.0 }
 0x19d   :  { %1443 = vadd.xlane.f32.xlu2 %v1442_v17  ;;  %1449 = vadd.xlane.f32.xlu1 %v1448_v4  ;;  %v580_v20 = vsel %vm579_vm9, %v545_v52, %v578_v47  ;;  %v561_v52 = vsel %vm504_vm4, %v560_v44, %v559_v62  ;;  %v570_v31 = vsel %vm504_vm4, %v569_v60, %v568_v12  ;;  %v1445_v17 = vsel %vm76_vm0, %v2874_v61, 0.0 }
 0x19e   :  { %v582_v5 = vsel %vm581_vm10, %v554_v18, %v580_v20  ;;  %v563_v19 = vsel %vm508_vm5, %v562_v57, %v561_v52  ;;  %v2389_v57 = vmov 0  }
 0x19f   :  { %v584_v7 = vsel %vm583_vm11, %v563_v19, %v582_v5  ;;  %2096 = vset.pattern.permute.xlu1 %v2389_v57  ;;  %2095 = vset.pattern.permute.xlu0 %v2389_v57 }
 0x1a0   :  { %v2977_v28 = vpop.xlane.xlu0 %449  ;;  %2094 = vset.pattern.permute.xlu2 %v2389_v57 }
 0x1a1   :  { %v571_v55 = vperm.slane %v2977_v28, %v2894_v54 }
 0x1a3   :  { %v572_v40 = vsel %vm508_vm5, %v571_v55, %v570_v31  ;;  %v1426_v4 = vpop.permute.xlu1 %1425 }
 0x1a4   :  { %v586_v21 = vsel %vm585_vm12, %v572_v40, %v584_v7  ;;  %v1454_v20 = vsel %vm76_vm0, %v1426_v4, 0.0 }
 0x1a5   :  { %1458 = vadd.xlane.f32.xlu1 %v1457_v32  ;;  %v589_v47 = vsel %vm588_vm13, %v586_v21, -inf }
 0x1a6   :  { %590 = vmax.xlane.f32.xlu0 %v589_v47 }
 0x1ae   :  { %1446 = vadd.xlane.f32.xlu0 %v1445_v17 }
 0x1b3   :  { %v1424_v44 = vpop.permute.xlu0 %1423 }
 0x1b4   :  { %v1451_v1 = vsel %vm76_vm0, %v1424_v44, 0.0 }
 0x1b5   :  { %1452 = vadd.xlane.f32.xlu2 %v1451_v1 }
 0x1b6   :  { %1455 = vadd.xlane.f32.xlu0 %v1454_v20 }
 0x1bb   :  { %v1430_v38 = vpop.permute.xlu0 %1429 }
 0x1bc   :  { %v1460_v35 = vsel %vm76_vm0, %v1430_v38, 0.0 }
 0x1bd   :  { %1461 = vadd.xlane.f32.xlu2 %v1460_v35 }
 0x219   :  { %v2995_v12 = vpop.xlane.xlu0 %590 }
 0x21a   :  { %v2998_v61 = vperm.slane %v2995_v12, 0  ;;  %v594_v18 = vperm.slane %v2995_v12, 1  ;;  %v3012_v40 = vperm.slane %v2995_v12, 2 }
 0x21c   :  { %v614_v62 = vsub.f32 %v2784_v6, %v594_v18  ;;  %v610_v60 = vsub.f32 %v2773_v58, %v2998_v61  ;;  %v609_v5 = vsub.f32 %v2739_v30, %v2998_v61  ;;  %v611_v19 = vsub.f32 %v2781_v0, %v2998_v61 }
 0x21d   :  { %v612_v31 = vsub.f32 %v2807_v23, %v2998_v61  ;;  %v615_v6 = vsub.f32 %v2778_v34, %v594_v18  ;;  %v3015_v30 = vperm.slane %v2995_v12, 3  ;;  %v619_v34 = vsub.f32 %v2792_v13, %v3012_v40 }
 0x21e   :  { %v659_v52 = vmul.f32 1.442695, %v614_v62  ;;  %v651_v39 = vmul.f32 1.442695, %v610_v60  ;;  %v649_v55 = vmul.f32 1.442695, %v609_v5  ;;  %v616_v17 = vsub.f32 %v2795_v56, %v594_v18 }
 0x21f   :  { %v653_v58 = vmul.f32 1.442695, %v611_v19  ;;  %v655_v7 = vmul.f32 1.442695, %v612_v31  ;;  %v661_v21 = vmul.f32 1.442695, %v615_v6  ;;  %v624_v23 = vsub.f32 %v2742_v33, %v3015_v30 }
 0x220   :  { %2200 = vpow2.f32 %v659_v52  ;;  %v669_v4 = vmul.f32 1.442695, %v619_v34  ;;  %v663_v20 = vmul.f32 1.442695, %v616_v17  ;;  %v617_v13 = vsub.f32 %v2831_v59, %v594_v18 }
 0x221   :  { %2202 = vpow2.f32 %v651_v39  ;;  %v679_v44 = vmul.f32 1.442695, %v624_v23  ;;  %v618_v33 = vsub.f32 %v2829_v48, %v594_v18  ;;  %v620_v56 = vsub.f32 %v2760_v45, %v3012_v40 }
 0x222   :  { %2204 = vpow2.f32 %v649_v55  ;;  %v665_v57 = vmul.f32 1.442695, %v617_v13  ;;  %v3045_v62 = vperm.slane %v2995_v12, 4  ;;  %v625_v45 = vsub.f32 %v2803_v2, %v3015_v30 }
 0x223   :  { %2206 = vpow2.f32 %v653_v58  ;;  %v667_v60 = vmul.f32 1.442695, %v618_v33  ;;  %v671_v52 = vmul.f32 1.442695, %v620_v56  ;;  %v621_v18 = vsub.f32 %v2789_v50, %v3012_v40 }
 0x224   :  { %2208 = vpow2.f32 %v655_v7  ;;  %v629_v48 = vsub.f32 %v2752_v43, %v3045_v62  ;;  %v681_v55 = vmul.f32 1.442695, %v625_v45  ;;  %v622_v43 = vsub.f32 %v2845_v11, %v3012_v40 }
 0x225   :  { %2210 = vpow2.f32 %v661_v21  ;;  %v673_v6 = vmul.f32 1.442695, %v621_v18  ;;  %v627_v50 = vsub.f32 %v2811_v36, %v3015_v30  ;;  %v613_v7 = vsub.f32 %v2819_v14, %v2998_v61 }
 0x226   :  { %v3017_v32 = vpop.eup %2200  ;;  %2212 = vpow2.f32 %v669_v4  ;;  %v689_v19 = vmul.f32 1.442695, %v629_v48  ;;  %v675_v21 = vmul.f32 1.442695, %v622_v43  ;;  %v3078_v34 = vperm.slane %v2995_v12, 5 }
 0x227   :  { %v3019_v47 = vpop.eup %2202  ;;  %785 = vperm.xlu1 %2096, %v3017_v32   ;;  %2214 = vpow2.f32 %v679_v44  ;;  %v685_v23 = vmul.f32 1.442695, %v627_v50  ;;  %v657_v4 = vmul.f32 1.442695, %v613_v7  ;;  %v630_v36 = vsub.f32 %v2809_v16, %v3045_v62 }
 0x228   :  { %v3022_v0 = vpop.eup %2204  ;;  %773 = vperm.xlu0 %2095, %v3019_v47   ;;  %2216 = vpow2.f32 %v663_v20  ;;  %v635_v14 = vsub.f32 %v2787_v41, %v3078_v34  ;;  %v626_v61 = vsub.f32 %v2797_v15, %v3015_v30  ;;  %v631_v41 = vsub.f32 %v2821_v22, %v3045_v62  ;;  %v3683_v15 = vld [vmem:[#allocation18_spill] sm:$0xff] }
 0x229   :  { %770 = vperm.xlu2 %2094, %v3022_v0   ;;  %v3031_v1 = vpop.eup %2206  ;;  %2218 = vpow2.f32 %v665_v57  ;;  %v691_v20 = vmul.f32 1.442695, %v630_v36  ;;  %v3126_v50 = vperm.slane %v2995_v12, 6  ;;  %v3687_v36 = vld [vmem:[#allocation17_spill] sm:$0xff] }
 0x22a   :  { %v3033_v38 = vpop.eup %2208  ;;  %2220 = vpow2.f32 %v667_v60  ;;  %v701_v13 = vmul.f32 1.442695, %v635_v14  ;;  %v683_v56 = vmul.f32 1.442695, %v626_v61  ;;  %v636_v60 = vsub.f32 %v3683_v15, %v3078_v34 }
 0x22b   :  { %v3036_v35 = vpop.eup %2210  ;;  %2222 = vpow2.f32 %v671_v52  ;;  %v623_v52 = vsub.f32 %v2825_v25, %v3012_v40  ;;  %v693_v45 = vmul.f32 1.442695, %v631_v41  ;;  %v633_v25 = vsub.f32 %v2835_v63, %v3045_v62  ;;  %v3685_v40 = vld [vmem:[#allocation15_spill] sm:$0xff] }
 0x22c   :  { %v3047_v5 = vpop.eup %2212  ;;  %2224 = vpow2.f32 %v681_v55  ;;  %v703_v48 = vmul.f32 1.442695, %v636_v60  ;;  %v634_v43 = vsub.f32 %v3685_v40, %v3078_v34  ;;  %v639_v14 = vsub.f32 %v3687_v36, %v3126_v50 }
 0x22d   :  { %v3049_v39 = vpop.eup %2214  ;;  %2226 = vpow2.f32 %v689_v19  ;;  %v677_v55 = vmul.f32 1.442695, %v623_v52  ;;  %v632_v61 = vsub.f32 %v2813_v9, %v3045_v62  ;;  %v3156_v52 = vpop.xlane.xlu2 %1443  ;;  %v642_v9 = vsub.f32 %v2817_v42, %v3126_v50  ;;  %v3690_v62 = vld [vmem:[#allocation16_spill] sm:$0xff] }
 0x22e   :  { %v3052_v59 = vpop.eup %2216  ;;  %2228 = vpow2.f32 %v673_v6  ;;  %v628_v6 = vsub.f32 %v2942_v24, %v3015_v30  ;;  %v699_v24 = vmul.f32 1.442695, %v634_v43 }
 0x22f   :  { %776 = vperm.xlu1 %2096, %v3031_v1   ;;  %v3062_v31 = vpop.eup %2218  ;;  %2230 = vpow2.f32 %v675_v21  ;;  %v3129_v21 = vperm.slane %v2995_v12, 7  ;;  %v695_v41 = vmul.f32 1.442695, %v632_v61 }
 0x230   :  { %779 = vperm.xlu0 %2095, %v3033_v38   ;;  %v3064_v58 = vpop.eup %2220  ;;  %2232 = vpow2.f32 %v685_v23  ;;  %v687_v7 = vmul.f32 1.442695, %v628_v6  ;;  %v697_v23 = vmul.f32 1.442695, %v633_v25 }
 0x231   :  { %788 = vperm.xlu2 %2094, %v3036_v35   ;;  %3682 = vst [vmem:[#allocation20_spill] sm:$0xff] %v3064_v58  ;;  %v3067_v2 = vpop.eup %2222  ;;  %2234 = vpow2.f32 %v657_v4  ;;  %v644_v12 = vsub.f32 %v2764_v53, %v3129_v21  ;;  %v637_v53 = vsub.f32 %v2898_v51, %v3078_v34  ;;  %v645_v42 = vsub.f32 %v2815_v26, %v3129_v21 }
 0x232   :  { %v3080_v17 = vpop.eup %2224  ;;  %2236 = vpow2.f32 %v691_v20  ;;  %v709_v20 = vmul.f32 1.442695, %v639_v14 }
 0x233   :  { %v3082_v44 = vpop.eup %2226  ;;  %2238 = vpow2.f32 %v701_v13  ;;  %v719_v13 = vmul.f32 1.442695, %v644_v12  ;;  %v721_v36 = vmul.f32 1.442695, %v645_v42 }
 0x234   :  { %v3085_v11 = vpop.eup %2228  ;;  %2240 = vpow2.f32 %v683_v56 }
 0x235   :  { %v3095_v33 = vpop.eup %2230  ;;  %2242 = vpow2.f32 %v693_v45  ;;  %v640_v45 = vsub.f32 %v3690_v62, %v3126_v50  ;;  %v3173_v43 = vpop.xlane.xlu2 %1452 }
 0x236   :  { %v3097_v57 = vpop.eup %2232  ;;  %2244 = vpow2.f32 %v703_v48  ;;  %v705_v48 = vmul.f32 1.442695, %v637_v53 }
 0x237   :  { %800 = vperm.xlu1 %2096, %v3047_v5   ;;  %v3100_v16 = vpop.eup %2234  ;;  %2246 = vpow2.f32 %v677_v55  ;;  %v715_v55 = vmul.f32 1.442695, %v642_v9  ;;  %v711_v25 = vmul.f32 1.442695, %v640_v45  ;;  %v3195_v9 = vpop.xlane.xlu1 %1440 }
 0x238   :  { %815 = vperm.xlu0 %2095, %v3049_v39   ;;  %v3110_v18 = vpop.eup %2236  ;;  %2248 = vpow2.f32 %v687_v7  ;;  %v647_v7 = vsub.f32 %v2823_v49, %v3129_v21  ;;  %v646_v49 = vsub.f32 %v2827_v27, %v3129_v21 }
 0x239   :  { %791 = vperm.xlu2 %2094, %v3052_v59   ;;  %v3112_v19 = vpop.eup %2238  ;;  %2250 = vpow2.f32 %v697_v23  ;;  %v3693_v23 = vld [vmem:[#allocation19_spill] sm:$0xff] }
 0x23a   :  { %3684 = vst [vmem:[#allocation18_spill] sm:$0xff] %v3112_v19  ;;  %v3115_v22 = vpop.eup %2240  ;;  %2252 = vpow2.f32 %v699_v24  ;;  %v641_v24 = vsub.f32 %v3693_v23, %v3126_v50  ;;  %v725_v14 = vmul.f32 1.442695, %v647_v7  ;;  %v723_v53 = vmul.f32 1.442695, %v646_v49 }
 0x23b   :  { %v3131_v4 = vpop.eup %2242  ;;  %2254 = vpow2.f32 %v709_v20 }
 0x23c   :  { %v3133_v30 = vpop.eup %2244  ;;  %2256 = vpow2.f32 %v719_v13  ;;  %v713_v61 = vmul.f32 1.442695, %v641_v24  ;;  %v638_v13 = vsub.f32 %v2833_v29, %v3078_v34  ;;  %v648_v29 = vsub.f32 %v2977_v28, %v3129_v21 }
 0x23d   :  { %3686 = vst [vmem:[#allocation15_spill] sm:$0xff] %v3133_v30  ;;  %v3136_v63 = vpop.eup %2246  ;;  %2258 = vpow2.f32 %v695_v41  ;;  %v3193_v41 = vpop.xlane.xlu2 %1461  ;;  %v643_v34 = vsub.f32 %v2857_v46, %v3126_v50 }
 0x23e   :  { %v3146_v56 = vpop.eup %2248  ;;  %2260 = vpow2.f32 %v705_v48  ;;  %v707_v45 = vmul.f32 1.442695, %v638_v13 }
 0x23f   :  { %794 = vperm.xlu1 %2096, %v3062_v31   ;;  %v3148_v15 = vpop.eup %2250  ;;  %2262 = vpow2.f32 %v715_v55  ;;  %v717_v7 = vmul.f32 1.442695, %v643_v34  ;;  %v3212_v23 = vpop.xlane.xlu1 %1449 }
 0x240   :  { %797 = vperm.xlu0 %2095, %v3064_v58   ;;  %3688 = vst [vmem:[#allocation17_spill] sm:$0xff] %v3148_v15  ;;  %v3151_v60 = vpop.eup %2252  ;;  %2264 = vpow2.f32 %v711_v25  ;;  %v727_v25 = vmul.f32 1.442695, %v648_v29 }
 0x241   :  { %803 = vperm.xlu2 %2094, %v3067_v2   ;;  %3689 = vst [vmem:[#allocation21_spill] sm:$0xff] %v3151_v60  ;;  %v3163_v6 = vpop.eup %2254  ;;  %2266 = vpow2.f32 %v721_v36  ;;  %v3217_v36 = vpop.xlane.xlu0 %1446 }
 0x242   :  { %3691 = vst [vmem:[#allocation16_spill] sm:$0xff] %v3163_v6  ;;  %v3165_v40 = vpop.eup %2256  ;;  %2268 = vpow2.f32 %v725_v14 }
 0x243   :  { %3692 = vst [vmem:[#allocation22_spill] sm:$0xff] %v3165_v40  ;;  %v3168_v51 = vpop.eup %2258  ;;  %2270 = vpow2.f32 %v713_v61 }
 0x244   :  { %v3180_v12 = vpop.eup %2260  ;;  %2272 = vpow2.f32 %v723_v53 }
 0x245   :  { %3694 = vst [vmem:[#allocation19_spill] sm:$0xff] %v3180_v12  ;;  %v3182_v20 = vpop.eup %2262  ;;  %2274 = vpow2.f32 %v707_v45 }
 0x246   :  { %3695 = vst [vmem:[#allocation23_spill] sm:$0xff] %v3182_v20  ;;  %v3185_v26 = vpop.eup %2264  ;;  %2276 = vpow2.f32 %v727_v25 }
 0x247   :  { %818 = vperm.xlu1 %2096, %v3080_v17   ;;  %3696 = vst [vmem:[#allocation24_spill] sm:$0xff] %v3185_v26  ;;  %v3197_v62 = vpop.eup %2266  ;;  %2278 = vpow2.f32 %v717_v7  ;;  %v3225_v50 = vpop.xlane.xlu1 %1458 }
 0x248   :  { %830 = vperm.xlu0 %2095, %v3082_v44   ;;  %3697 = vst [vmem:[#allocation25_spill] sm:$0xff] %v3197_v62  ;;  %v3199_v48 = vpop.eup %2268 }
 0x249   :  { %806 = vperm.xlu2 %2094, %v3085_v11   ;;  %3698 = vst [vmem:[#allocation26_spill] sm:$0xff] %v3199_v48  ;;  %v3202_v27 = vpop.eup %2270  ;;  %v3228_v14 = vpop.xlane.xlu0 %1455 }
 0x24a   :  { %3699 = vst [vmem:[#allocation27_spill] sm:$0xff] %v3202_v27  ;;  %v3210_v42 = vpop.eup %2272 }
 0x24b   :  { %3700 = vst [vmem:[#allocation28_spill] sm:$0xff] %v3210_v42  ;;  %v3215_v24 = vpop.eup %2274 }
 0x24c   :  { %3701 = vst [vmem:[#allocation29_spill] sm:$0xff] %v3215_v24  ;;  %v3220_v21 = vpop.eup %2276 }
 0x24d   :  { %3702 = vst [vmem:[#allocation30_spill] sm:$0xff] %v3220_v21  ;;  %v3223_v46 = vpop.eup %2278 }
 0x24e   :  { %3703 = vst [vmem:[#allocation31_spill] sm:$0xff] %v3223_v46 }
 0x24f   :  { %809 = vperm.xlu1 %2096, %v3095_v33  }
 0x250   :  { %824 = vperm.xlu0 %2095, %v3097_v57  }
 0x251   :  { %782 = vperm.xlu2 %2094, %v3100_v16  }
 0x257   :  { %833 = vperm.xlu1 %2096, %v3110_v18  }
 0x258   :  { %848 = vperm.xlu0 %2095, %v3112_v19  }
 0x259   :  { %821 = vperm.xlu2 %2094, %v3115_v22  }
 0x25f   :  { %836 = vperm.xlu1 %2096, %v3131_v4  }
 0x260   :  { %851 = vperm.xlu0 %2095, %v3133_v30  }
 0x261   :  { %812 = vperm.xlu2 %2094, %v3136_v63  }
 0x267   :  { %827 = vperm.xlu1 %2096, %v3146_v56  }
 0x268   :  { %842 = vperm.xlu0 %2095, %v3148_v15  }
 0x269   :  { %845 = vperm.xlu2 %2094, %v3151_v60  }
 0x26f   :  { %860 = vperm.xlu1 %2096, %v3163_v6  }
 0x270   :  { %875 = vperm.xlu0 %2095, %v3165_v40  }
 0x271   :  { %839 = vperm.xlu2 %2094, %v3168_v51  }
 0x277   :  { %854 = vperm.xlu1 %2096, %v3180_v12  }
 0x278   :  { %869 = vperm.xlu0 %2095, %v3182_v20  }
 0x279   :  { %863 = vperm.xlu2 %2094, %v3185_v26  }
 0x27f   :  { %878 = vperm.xlu1 %2096, %v3197_v62  }
 0x280   :  { %884 = vperm.xlu0 %2095, %v3199_v48  }
 0x281   :  { %866 = vperm.xlu2 %2094, %v3202_v27  }
 0x283   :  { %v771_v55 = vpop.permute.xlu2 %770 }
 0x284   :  { %v889_v29 = vperm.slane %v771_v55, %v2837_v3 }
 0x287   :  { %881 = vperm.xlu1 %2096, %v3210_v42  }
 0x289   :  { %857 = vperm.xlu2 %2094, %v3215_v24  }
 0x28b   :  { %v789_v28 = vpop.permute.xlu2 %788 }
 0x28c   :  { %v899_v13 = vperm.slane %v789_v28, %v2843_v37 }
 0x28f   :  { %887 = vperm.xlu1 %2096, %v3220_v21  }
 0x291   :  { %872 = vperm.xlu2 %2094, %v3223_v46  }
 0x293   :  { %v792_v61 = vpop.permute.xlu2 %791 }
 0x294   :  { %v901_v34 = vperm.slane %v792_v61, %v2840_v8  ;;  %v1472_v61 = vperm.slane %v3156_v52, %v2837_v3 }
 0x299   :  { %v786_v49 = vpop.permute.xlu1 %785 }
 0x29a   :  { %v898_v53 = vperm.slane %v786_v49, %v2837_v3  ;;  %v774_v45 = vpop.permute.xlu0 %773 }
 0x29b   :  { %v804_v25 = vpop.permute.xlu2 %803  ;;  %v890_v7 = vperm.slane %v774_v45, %v2843_v37 }
 0x29c   :  { %v900_v21 = vsel %vm496_vm2, %v899_v13, %v898_v53  ;;  %v1473_v13 = vperm.slane %v3217_v36, %v2837_v3 }
 0x29d   :  { %v891_v48 = vsel %vm496_vm2, %v890_v7, %v889_v29  ;;  %v902_v42 = vsel %vm500_vm3, %v901_v34, %v900_v21  ;;  %v1471_v21 = vperm.slane %v3195_v9, %v2837_v3  ;;  %v1475_v34 = vperm.slane %v3173_v43, %v2837_v3 }
 0x29f   :  { %v1479_v53 = vsel %vm573_vm6, %v1472_v61, %v1471_v21 }
 0x2a0   :  { %v1480_v29 = vsel %vm575_vm7, %v1473_v13, %v1479_v53  ;;  %v1476_v13 = vperm.slane %v3228_v14, %v2837_v3  ;;  %v1478_v53 = vperm.slane %v3193_v41, %v2837_v3 }
 0x2a1   :  { %v777_v15 = vpop.permute.xlu1 %776 }
 0x2a2   :  { %v892_v46 = vperm.slane %v777_v15, %v2840_v8  ;;  %v780_v28 = vpop.permute.xlu0 %779 }
 0x2a3   :  { %v807_v58 = vpop.permute.xlu2 %806  ;;  %v894_v49 = vperm.slane %v780_v28, %v2882_v10  ;;  %v1474_v28 = vperm.slane %v3212_v23, %v2837_v3 }
 0x2a4   :  { %v893_v55 = vsel %vm500_vm3, %v892_v46, %v891_v48  ;;  %v908_v48 = vperm.slane %v804_v25, %v2843_v37 }
 0x2a5   :  { %v895_v45 = vsel %vm504_vm4, %v894_v49, %v893_v55  ;;  %v910_v49 = vperm.slane %v807_v58, %v2840_v8  ;;  %v1481_v61 = vsel %vm577_vm8, %v1474_v28, %v1480_v29 }
 0x2a6   :  { %v1482_v25 = vsel %vm579_vm9, %v1475_v34, %v1481_v61 }
 0x2a7   :  { %v1483_v58 = vsel %vm581_vm10, %v1476_v13, %v1482_v25 }
 0x2a9   :  { %v801_v15 = vpop.permute.xlu1 %800 }
 0x2aa   :  { %v907_v46 = vperm.slane %v801_v15, %v2837_v3  ;;  %v816_v7 = vpop.permute.xlu0 %815 }
 0x2ab   :  { %v783_v55 = vpop.permute.xlu2 %782 }
 0x2ac   :  { %v909_v24 = vsel %vm496_vm2, %v908_v48, %v907_v46  ;;  %v896_v15 = vperm.slane %v783_v55, %v2894_v54  ;;  %v1477_v48 = vperm.slane %v3225_v50, %v2837_v3 }
 0x2ad   :  { %v911_v21 = vsel %vm500_vm3, %v910_v49, %v909_v24 }
 0x2ae   :  { %v1484_v34 = vsel %vm583_vm11, %v1477_v48, %v1483_v58  ;;  %v897_v61 = vsel %vm508_vm5, %v896_v15, %v895_v45 }
 0x2af   :  { %v1485_v40 = vsel %vm585_vm12, %v1478_v53, %v1484_v34 }
 0x2b0   :  { %v1488_v25 = vsel %vm1487_vm14, %v1485_v40, -inf }
 0x2b1   :  { %v795_v62 = vpop.permute.xlu1 %794 }
 0x2b2   :  { %v903_v29 = vperm.slane %v795_v62, %v2882_v10  ;;  %v798_v46 = vpop.permute.xlu0 %797 }
 0x2b3   :  { %v905_v28 = vperm.slane %v798_v46, %v2894_v54  ;;  %v822_v49 = vpop.permute.xlu2 %821  ;;  %v916_v46 = vperm.slane %v816_v7, %v2837_v3 }
 0x2b4   :  { %v904_v24 = vsel %vm504_vm4, %v903_v29, %v902_v42 }
 0x2b5   :  { %v906_v55 = vsel %vm508_vm5, %v905_v28, %v904_v24 }
 0x2b6   :  { %v961_v13 = vsel %vm573_vm6, %v906_v55, %v897_v61 }
 0x2b9   :  { %v819_v62 = vpop.permute.xlu1 %818  ;;  %1489 = vmax.xlane.f32.xlu1 %v1488_v25 }
 0x2ba   :  { %v917_v42 = vperm.slane %v819_v62, %v2843_v37  ;;  %v831_v29 = vpop.permute.xlu0 %830 }
 0x2bb   :  { %v813_v48 = vpop.permute.xlu2 %812 }
 0x2bc   :  { %v918_v58 = vsel %vm496_vm2, %v917_v42, %v916_v46  ;;  %v914_v53 = vperm.slane %v813_v48, %v2894_v54  ;;  %v919_v42 = vperm.slane %v822_v49, %v2840_v8 }
 0x2be   :  { %v920_v27 = vsel %vm500_vm3, %v919_v42, %v918_v58 }
 0x2c1   :  { %v810_v45 = vpop.permute.xlu1 %809 }
 0x2c2   :  { %v912_v15 = vperm.slane %v810_v45, %v2882_v10  ;;  %v825_v28 = vpop.permute.xlu0 %824 }
 0x2c3   :  { %v846_v61 = vpop.permute.xlu2 %845  ;;  %v921_v46 = vperm.slane %v825_v28, %v2882_v10 }
 0x2c4   :  { %v913_v24 = vsel %vm504_vm4, %v912_v15, %v911_v21 }
 0x2c5   :  { %v915_v40 = vsel %vm508_vm5, %v914_v53, %v913_v24  ;;  %v922_v21 = vsel %vm504_vm4, %v921_v46, %v920_v27  ;;  %v925_v27 = vperm.slane %v831_v29, %v2837_v3 }
 0x2c6   :  { %v962_v34 = vsel %vm575_vm7, %v915_v40, %v961_v13 }
 0x2c9   :  { %v834_v7 = vpop.permute.xlu1 %833 }
 0x2ca   :  { %v849_v55 = vpop.permute.xlu0 %848  ;;  %v926_v49 = vperm.slane %v834_v7, %v2843_v37 }
 0x2cb   :  { %v840_v62 = vpop.permute.xlu2 %839  ;;  %v935_v58 = vperm.slane %v849_v55, %v2843_v37 }
 0x2cc   :  { %v930_v29 = vperm.slane %v840_v62, %v2882_v10 }
 0x2d1   :  { %v837_v25 = vpop.permute.xlu1 %836 }
 0x2d2   :  { %v852_v20 = vpop.permute.xlu0 %851  ;;  %v928_v42 = vperm.slane %v837_v25, %v2840_v8 }
 0x2d3   :  { %v864_v15 = vpop.permute.xlu2 %863  ;;  %v937_v46 = vperm.slane %v852_v20, %v2840_v8 }
 0x2d9   :  { %v828_v45 = vpop.permute.xlu1 %827 }
 0x2da   :  { %v923_v48 = vperm.slane %v828_v45, %v2894_v54  ;;  %v843_v24 = vpop.permute.xlu0 %842  ;;  %v934_v45 = vperm.slane %v846_v61, %v2837_v3 }
 0x2db   :  { %v867_v12 = vpop.permute.xlu2 %866  ;;  %v932_v25 = vperm.slane %v843_v24, %v2894_v54 }
 0x2dc   :  { %v924_v13 = vsel %vm508_vm5, %v923_v48, %v922_v21  ;;  %v927_v21 = vsel %vm496_vm2, %v926_v49, %v925_v27  ;;  %v936_v7 = vsel %vm496_vm2, %v935_v58, %v934_v45  ;;  %v946_v49 = vperm.slane %v867_v12, %v2840_v8 }
 0x2dd   :  { %v963_v53 = vsel %vm577_vm8, %v924_v13, %v962_v34  ;;  %v944_v13 = vperm.slane %v864_v15, %v2843_v37  ;;  %v929_v55 = vsel %vm500_vm3, %v928_v42, %v927_v21  ;;  %v938_v20 = vsel %vm500_vm3, %v937_v46, %v936_v7 }
 0x2de   :  { %v931_v42 = vsel %vm504_vm4, %v930_v29, %v929_v55 }
 0x2df   :  { %v933_v62 = vsel %vm508_vm5, %v932_v25, %v931_v42 }
 0x2e0   :  { %v964_v21 = vsel %vm579_vm9, %v933_v62, %v963_v53 }
 0x2e1   :  { %v861_v40 = vpop.permute.xlu1 %860 }
 0x2e2   :  { %v876_v26 = vpop.permute.xlu0 %875  ;;  %v943_v34 = vperm.slane %v861_v40, %v2837_v3 }
 0x2e3   :  { %v858_v28 = vpop.permute.xlu2 %857  ;;  %v952_v46 = vperm.slane %v876_v26, %v2837_v3 }
 0x2e4   :  { %v945_v40 = vsel %vm496_vm2, %v944_v13, %v943_v34  ;;  %v941_v24 = vperm.slane %v858_v28, %v2894_v54 }
 0x2e9   :  { %v855_v30 = vpop.permute.xlu1 %854 }
 0x2ea   :  { %v870_v19 = vpop.permute.xlu0 %869  ;;  %v939_v48 = vperm.slane %v855_v30, %v2882_v10 }
 0x2eb   :  { %v873_v61 = vpop.permute.xlu2 %872  ;;  %v948_v30 = vperm.slane %v870_v19, %v2882_v10  ;;  %v947_v19 = vsel %vm500_vm3, %v946_v49, %v945_v40 }
 0x2ec   :  { %v940_v15 = vsel %vm504_vm4, %v939_v48, %v938_v20  ;;  %v950_v34 = vperm.slane %v873_v61, %v2894_v54 }
 0x2ed   :  { %v942_v12 = vsel %vm508_vm5, %v941_v24, %v940_v15  ;;  %v949_v45 = vsel %vm504_vm4, %v948_v30, %v947_v19 }
 0x2ee   :  { %v951_v26 = vsel %vm508_vm5, %v950_v34, %v949_v45  ;;  %v965_v7 = vsel %vm581_vm10, %v942_v12, %v964_v21 }
 0x2ef   :  { %v966_v20 = vsel %vm583_vm11, %v951_v26, %v965_v7 }
 0x2f1   :  { %v879_v6 = vpop.permute.xlu1 %878 }
 0x2f2   :  { %v953_v58 = vperm.slane %v879_v6, %v2843_v37  ;;  %v885_v48 = vpop.permute.xlu0 %884 }
 0x2f4   :  { %v954_v6 = vsel %vm496_vm2, %v953_v58, %v952_v46 }
 0x2f9   :  { %v882_v60 = vpop.permute.xlu1 %881 }
 0x2fa   :  { %v955_v27 = vperm.slane %v882_v60, %v2840_v8  ;;  %v957_v60 = vperm.slane %v885_v48, %v2882_v10 }
 0x2fc   :  { %v956_v28 = vsel %vm500_vm3, %v955_v27, %v954_v6 }
 0x2fd   :  { %v958_v25 = vsel %vm504_vm4, %v957_v60, %v956_v28 }
 0x301   :  { %v888_v13 = vpop.permute.xlu1 %887 }
 0x302   :  { %v959_v55 = vperm.slane %v888_v13, %v2894_v54 }
 0x304   :  { %v960_v29 = vsel %vm508_vm5, %v959_v55, %v958_v25 }
 0x305   :  { %v967_v40 = vsel %vm585_vm12, %v960_v29, %v966_v20 }
 0x306   :  { %v969_v53 = vsel %vm588_vm13, %v967_v40, 0.0 }
 0x307   :  { %970 = vadd.xlane.f32.xlu1 %v969_v53 }
 0x32c   :  { %v1490_v61 = vpop.xlane.xlu1 %1489 }
 0x32d   :  { %v1493_v30 = vperm.slane %v1490_v61, 1  ;;  %v1492_v49 = vperm.slane %v1490_v61, 0  ;;  %v1494_v15 = vperm.slane %v1490_v61, 2  ;;  %v1496_v27 = vperm.slane %v1490_v61, 4 }
 0x32e   :  { %v1495_v62 = vperm.slane %v1490_v61, 3  ;;  %v1497_v46 = vperm.slane %v1490_v61, 5  ;;  %v1499_v21 = vperm.slane %v1490_v61, 7  ;;  %v1498_v28 = vperm.slane %v1490_v61, 6 }
 0x32f   :  { %v1509_v58 = vsub.f32 %v3156_v52, %v1493_v30  ;;  %v1508_v42 = vsub.f32 %v3195_v9, %v1492_v49  ;;  %v1510_v24 = vsub.f32 %v3217_v36, %v1494_v15  ;;  %v1512_v45 = vsub.f32 %v3173_v43, %v1496_v27 }
 0x330   :  { %v1511_v48 = vsub.f32 %v3212_v23, %v1495_v62  ;;  %v1513_v6 = vsub.f32 %v3228_v14, %v1497_v46  ;;  %v1515_v43 = vsub.f32 %v3193_v41, %v1499_v21  ;;  %v1514_v23 = vsub.f32 %v3225_v50, %v1498_v28 }
 0x331   :  { %v1518_v34 = vmul.f32 1.442695, %v1509_v58  ;;  %v1516_v19 = vmul.f32 1.442695, %v1508_v42  ;;  %v1520_v12 = vmul.f32 1.442695, %v1510_v24 }
 0x332   :  { %v1524_v52 = vmul.f32 1.442695, %v1512_v45  ;;  %v1522_v9 = vmul.f32 1.442695, %v1511_v48  ;;  %v1526_v60 = vmul.f32 1.442695, %v1513_v6 }
 0x333   :  { %2280 = vpow2.f32 %v1518_v34  ;;  %v1530_v14 = vmul.f32 1.442695, %v1515_v43  ;;  %v1528_v7 = vmul.f32 1.442695, %v1514_v23 }
 0x334   :  { %2282 = vpow2.f32 %v1516_v19 }
 0x335   :  { %2284 = vpow2.f32 %v1520_v12 }
 0x336   :  { %2286 = vpow2.f32 %v1524_v52 }
 0x337   :  { %2288 = vpow2.f32 %v1522_v9 }
 0x338   :  { %2290 = vpow2.f32 %v1526_v60 }
 0x339   :  { %v3340_v36 = vpop.eup %2280  ;;  %2292 = vpow2.f32 %v1530_v14 }
 0x33a   :  { %v3342_v13 = vpop.eup %2282  ;;  %1544 = vperm.xlu0 %2095, %v3340_v36   ;;  %2294 = vpow2.f32 %v1528_v7 }
 0x33b   :  { %v3345_v26 = vpop.eup %2284  ;;  %1541 = vperm.xlu2 %2094, %v3342_v13  }
 0x33c   :  { %1547 = vperm.xlu1 %2096, %v3345_v26   ;;  %v3351_v55 = vpop.eup %2286 }
 0x33d   :  { %v3353_v25 = vpop.eup %2288 }
 0x33e   :  { %v3356_v29 = vpop.eup %2290 }
 0x33f   :  { %v3360_v41 = vpop.eup %2292 }
 0x340   :  { %v3362_v50 = vpop.eup %2294 }
 0x342   :  { %1553 = vperm.xlu0 %2095, %v3351_v55  }
 0x343   :  { %1550 = vperm.xlu2 %2094, %v3353_v25  }
 0x344   :  { %1556 = vperm.xlu1 %2096, %v3356_v29  }
 0x34a   :  { %1562 = vperm.xlu0 %2095, %v3360_v41  }
 0x34b   :  { %1559 = vperm.xlu2 %2094, %v3362_v50  }
 0x37a   :  { %v971_v20 = vpop.xlane.xlu1 %970 }
 0x37b   :  { %2296 = vrcp.f32 %v971_v20 }
 0x381   :  { %v3366_v40 = vpop.eup %2296 }
 0x382   :  { %v976_v53 = vperm.slane %v3366_v40, 2  ;;  %v3370_v61 = vperm.slane %v3366_v40, 1  ;;  %v974_v30 = vperm.slane %v3366_v40, 0  ;;  %v977_v49 = vperm.slane %v3366_v40, 3 }
 0x384   :  { %v1000_v15 = vmul.f32 %v3047_v5, %v976_v53  ;;  %v1001_v58 = vmul.f32 %v3067_v2, %v976_v53  ;;  %v997_v42 = vmul.f32 %v3052_v59, %v3370_v61  ;;  %v998_v24 = vmul.f32 %v3062_v31, %v3370_v61 }
 0x385   :  { %v990_v27 = vmul.f32 %v3022_v0, %v974_v30  ;;  %v991_v62 = vmul.f32 %v3019_v47, %v974_v30  ;;  %v1005_v12 = vmul.f32 %v3049_v39, %v977_v49  ;;  %v1006_v5 = vmul.f32 %v3080_v17, %v977_v49 }
 0x386   :  { %v3382_v46 = vpack.c.bf16 %v1001_v58, %v1000_v15  ;;  %v3384_v34 = vpack.c.bf16 %v998_v24, %v997_v42  ;;  %v1002_v45 = vmul.f32 %v3085_v11, %v976_v53  ;;  %v1003_v31 = vmul.f32 %v3095_v33, %v976_v53 }
 0x387   :  { %v1030_v19 = vpack.c.bf16 %v991_v62, %v990_v27  ;;  %v3392_v47 = vpack.c.bf16 %v1006_v5, %v1005_v12  ;;  %v994_v17 = vmul.f32 %v3100_v16, %v974_v30  ;;  %v995_v21 = vmul.f32 %v3017_v32, %v3370_v61 }
 0x388   :  { %v1089_v2 = vunpack.c.h.b16 %v3382_v46  ;;  %v1085_v59 = vunpack.c.l.b16 %v3384_v34  ;;  %v1037_v48 = vpack.c.bf16 %v1003_v31, %v1002_v45  ;;  %v996_v11 = vmul.f32 %v3036_v35, %v3370_v61 }
 0x389   :  { %v1078_v0 = vunpack.c.l.b16 %v1030_v19  ;;  %v1094_v6 = vunpack.c.h.b16 %v3392_v47  ;;  %v1079_v52 = vunpack.c.h.b16 %v1030_v19  ;;  %v3401_v33 = vperm.slane %v3366_v40, 4 }
 0x38a   :  { %1152 = vperm.xlu2 %2094, %v1089_v2   ;;  %1140 = vperm.xlu1 %2096, %v1085_v59   ;;  %v1090_v39 = vunpack.c.l.b16 %v1037_v48  ;;  %v1032_v9 = vpack.c.bf16 %v994_v17, %v994_v17  ;;  %v1033_v28 = vpack.c.bf16 %v996_v11, %v995_v21  ;;  %v1091_v60 = vunpack.c.h.b16 %v1037_v48  ;;  %v3706_v48 = vld [vmem:[#allocation16_spill] sm:$0xff]  ;;  %v3708_v11 = vld [vmem:[#allocation15_spill] sm:$0xff] }
 0x38b   :  { %1119 = vperm.xlu0 %2095, %v1078_v0   ;;  %v1010_v43 = vmul.f32 %v3082_v44, %v3401_v33  ;;  %v1011_v23 = vmul.f32 %v3110_v18, %v3401_v33  ;;  %v1007_v32 = vmul.f32 %v3115_v22, %v977_v49  ;;  %v1008_v35 = vmul.f32 %v3097_v57, %v977_v49 }
 0x38c   :  { %v1082_v16 = vunpack.c.l.b16 %v1032_v9  ;;  %v1083_v14 = vunpack.c.l.b16 %v1033_v28  ;;  %v1012_v15 = vmul.f32 %v3131_v4, %v3401_v33  ;;  %v1013_v18 = vmul.f32 %v3168_v51, %v3401_v33  ;;  %v3704_v51 = vld [vmem:[#allocation21_spill] sm:$0xff] }
 0x38d   :  { %v3409_v7 = vpack.c.bf16 %v1011_v23, %v1010_v43  ;;  %v3411_v20 = vpack.c.bf16 %v1008_v35, %v1007_v32  ;;  %v1004_v57 = vmul.f32 %v3136_v63, %v976_v53  ;;  %v1084_v22 = vunpack.c.h.b16 %v1033_v28  ;;  %v3705_v63 = vld [vmem:[#allocation18_spill] sm:$0xff]  ;;  %v3709_v28 = vld [vmem:[#allocation19_spill] sm:$0xff] }
 0x38e   :  { %v992_v42 = vmul.f32 %v3031_v1, %v974_v30  ;;  %v993_v24 = vmul.f32 %v3033_v38, %v974_v30  ;;  %v1043_v27 = vpack.c.bf16 %v1013_v18, %v1012_v15  ;;  %v979_v4 = vperm.slane %v3366_v40, 5  ;;  %v3711_v35 = vld [vmem:[#allocation23_spill] sm:$0xff] }
 0x38f   :  { %v1099_v44 = vunpack.c.h.b16 %v3409_v7  ;;  %v1095_v58 = vunpack.c.l.b16 %v3411_v20  ;;  %v1038_v62 = vpack.c.bf16 %v1004_v57, %v1004_v57  ;;  %v1009_v12 = vmul.f32 %v3146_v56, %v977_v49  ;;  %v3707_v49 = vld [vmem:[#allocation24_spill] sm:$0xff]  ;;  %v3713_v57 = vld [vmem:[#allocation25_spill] sm:$0xff] }
 0x390   :  { %v1031_v19 = vpack.c.bf16 %v993_v24, %v992_v42  ;;  %v1100_v5 = vunpack.c.l.b16 %v1043_v27  ;;  %v1015_v59 = vmul.f32 %v3704_v51, %v979_v4  ;;  %v1016_v53 = vmul.f32 %v3705_v63, %v979_v4 }
 0x391   :  { %v1092_v2 = vunpack.c.l.b16 %v1038_v62  ;;  %v1041_v1 = vpack.c.bf16 %v1009_v12, %v1009_v12  ;;  %v980_v30 = vperm.slane %v3366_v40, 6  ;;  %v1101_v21 = vunpack.c.h.b16 %v1043_v27 }
 0x392   :  { %1167 = vperm.xlu2 %2094, %v1094_v6   ;;  %1155 = vperm.xlu1 %2096, %v1090_v39   ;;  %v1080_v45 = vunpack.c.l.b16 %v1031_v19  ;;  %v3426_v38 = vpack.c.bf16 %v1016_v53, %v1015_v59  ;;  %v1088_v39 = vunpack.c.l.b16 %v3382_v46  ;;  %v1017_v9 = vmul.f32 %v3708_v11, %v979_v4  ;;  %v3710_v46 = vld [vmem:[#allocation27_spill] sm:$0xff] }
 0x393   :  { %1122 = vperm.xlu0 %2095, %v1079_v52   ;;  %v1097_v31 = vunpack.c.l.b16 %v1041_v1  ;;  %v1020_v56 = vmul.f32 %v3706_v48, %v980_v30  ;;  %v1021_v6 = vmul.f32 %v3707_v49, %v980_v30  ;;  %v1081_v43 = vunpack.c.h.b16 %v1031_v19  ;;  %v3714_v19 = vld [vmem:[#allocation29_spill] sm:$0xff]  ;;  %v3716_v53 = vld [vmem:[#allocation31_spill] sm:$0xff] }
 0x394   :  { %v1103_v0 = vunpack.c.l.b16 %v3426_v38  ;;  %v3438_v23 = vperm.slane %v3366_v40, 7  ;;  %v1022_v32 = vmul.f32 %v3710_v46, %v980_v30  ;;  %v1086_v42 = vunpack.c.h.b16 %v3384_v34 }
 0x395   :  { %v1048_v17 = vpack.c.bf16 %v1021_v6, %v1020_v56  ;;  %v1019_v12 = vmul.f32 %v3714_v19, %v979_v4  ;;  %v1542_v48 = vpop.permute.xlu2 %1541 }
 0x396   :  { %v1564_v6 = vperm.slane %v1542_v48, %v2837_v3 }
 0x397   :  { %v1108_v52 = vunpack.c.l.b16 %v1048_v17  ;;  %v1047_v34 = vpack.c.bf16 %v1019_v12, %v1019_v12  ;;  %v3718_v12 = vld [vmem:[#allocation28_spill] sm:$0xff] }
 0x399   :  { %v1107_v63 = vunpack.c.l.b16 %v1047_v34 }
 0x39a   :  { %1158 = vperm.xlu2 %2094, %v1091_v60   ;;  %1131 = vperm.xlu1 %2096, %v1082_v16   ;;  %v1018_v60 = vmul.f32 %v3709_v28, %v979_v4 }
 0x39b   :  { %1134 = vperm.xlu0 %2095, %v1083_v14   ;;  %v1023_v14 = vmul.f32 %v3711_v35, %v980_v30  ;;  %v1104_v35 = vunpack.c.h.b16 %v3426_v38 }
 0x39c   :  { %v3435_v16 = vpack.c.bf16 %v1018_v60, %v1017_v9 }
 0x39d   :  { %v3448_v24 = vpack.c.bf16 %v1023_v14, %v1022_v32 }
 0x39e   :  { %v1106_v15 = vunpack.c.h.b16 %v3435_v16 }
 0x39f   :  { %v1110_v62 = vunpack.c.l.b16 %v3448_v24 }
 0x3a2   :  { %1182 = vperm.xlu2 %2094, %v1099_v44   ;;  %1170 = vperm.xlu1 %2096, %v1095_v58   ;;  %v1109_v44 = vunpack.c.h.b16 %v1048_v17  ;;  %v3712_v58 = vld [vmem:[#allocation22_spill] sm:$0xff] }
 0x3a3   :  { %1137 = vperm.xlu0 %2095, %v1084_v22   ;;  %v1025_v18 = vmul.f32 %v3712_v58, %v3438_v23  ;;  %v1026_v22 = vmul.f32 %v3713_v57, %v3438_v23  ;;  %v3717_v57 = vld [vmem:[#allocation17_spill] sm:$0xff] }
 0x3a5   :  { %v1051_v40 = vpack.c.bf16 %v1026_v22, %v1025_v18  ;;  %v1105_v18 = vunpack.c.l.b16 %v3435_v16  ;;  %v1014_v22 = vmul.f32 %v3717_v57, %v3401_v33 }
 0x3a7   :  { %v1114_v27 = vunpack.c.h.b16 %v1051_v40  ;;  %v1044_v38 = vpack.c.bf16 %v1014_v22, %v1014_v22  ;;  %v1113_v19 = vunpack.c.l.b16 %v1051_v40  ;;  %v3720_v40 = vld [vmem:[#allocation30_spill] sm:$0xff] }
 0x3aa   :  { %1185 = vperm.xlu2 %2094, %v1100_v5   ;;  %1161 = vperm.xlu1 %2096, %v1092_v2   ;;  %v1093_v5 = vunpack.c.l.b16 %v3392_v47  ;;  %v3715_v2 = vld [vmem:[#allocation20_spill] sm:$0xff]  ;;  %v1098_v47 = vunpack.c.l.b16 %v3409_v7 }
 0x3ab   :  { %1125 = vperm.xlu0 %2095, %v1080_v45   ;;  %v999_v51 = vmul.f32 %v3715_v2, %v3370_v61  ;;  %v1024_v45 = vmul.f32 %v3716_v53, %v980_v30  ;;  %v3719_v2 = vld [vmem:[#allocation26_spill] sm:$0xff]  ;;  %v1111_v53 = vunpack.c.h.b16 %v3448_v24 }
 0x3ad   :  { %v1035_v59 = vpack.c.bf16 %v999_v51, %v999_v51  ;;  %v1028_v51 = vmul.f32 %v3719_v2, %v3438_v23 }
 0x3ae   :  { %v1548_v56 = vpop.permute.xlu1 %1547 }
 0x3af   :  { %v1087_v1 = vunpack.c.l.b16 %v1035_v59  ;;  %v1566_v30 = vperm.slane %v1548_v56, %v2837_v3 }
 0x3b2   :  { %1176 = vperm.xlu2 %2094, %v1097_v31   ;;  %1194 = vperm.xlu1 %2096, %v1103_v0   ;;  %v1545_v31 = vpop.permute.xlu0 %1544  ;;  %v1050_v0 = vpack.c.bf16 %v1024_v45, %v1024_v45 }
 0x3b3   :  { %1149 = vperm.xlu0 %2095, %v1088_v39   ;;  %v1565_v61 = vperm.slane %v1545_v31, %v2837_v3  ;;  %v1551_v39 = vpop.permute.xlu2 %1550 }
 0x3b4   :  { %v1112_v4 = vunpack.c.l.b16 %v1050_v0  ;;  %v1567_v9 = vperm.slane %v1551_v39, %v2837_v3 }
 0x3b5   :  { %v1572_v17 = vsel %vm573_vm6, %v1565_v61, %v1564_v6 }
 0x3b6   :  { %v1557_v11 = vpop.permute.xlu1 %1556 }
 0x3b7   :  { %v1569_v28 = vperm.slane %v1557_v11, %v2837_v3 }
 0x3ba   :  { %1209 = vperm.xlu2 %2094, %v1108_v52   ;;  %1188 = vperm.xlu1 %2096, %v1101_v21   ;;  %v1554_v49 = vpop.permute.xlu0 %1553  ;;  %v1096_v52 = vunpack.c.h.b16 %v3411_v20  ;;  %v1573_v21 = vsel %vm575_vm7, %v1566_v30, %v1572_v17 }
 0x3bb   :  { %1128 = vperm.xlu0 %2095, %v1081_v43   ;;  %v1568_v7 = vperm.slane %v1554_v49, %v2837_v3  ;;  %v1574_v60 = vsel %vm577_vm8, %v1567_v9, %v1573_v21  ;;  %v1560_v32 = vpop.permute.xlu2 %1559 }
 0x3bd   :  { %v1575_v43 = vsel %vm579_vm9, %v1568_v7, %v1574_v60 }
 0x3be   :  { %v1576_v14 = vsel %vm581_vm10, %v1569_v28, %v1575_v43 }
 0x3c2   :  { %1203 = vperm.xlu2 %2094, %v1106_v15   ;;  %1212 = vperm.xlu1 %2096, %v1109_v44   ;;  %v1563_v46 = vpop.permute.xlu0 %1562  ;;  %v1570_v15 = vperm.slane %v1560_v32, %v2837_v3 }
 0x3c3   :  { %1143 = vperm.xlu0 %2095, %v1086_v42   ;;  %v1571_v20 = vperm.slane %v1563_v46, %v2837_v3 }
 0x3c4   :  { %v1577_v44 = vsel %vm583_vm11, %v1570_v15, %v1576_v14 }
 0x3c5   :  { %v1578_v58 = vsel %vm585_vm12, %v1571_v20, %v1577_v44 }
 0x3c6   :  { %v1580_v42 = vsel %vm1487_vm14, %v1578_v58, 0.0 }
 0x3ca   :  { %1227 = vperm.xlu2 %2094, %v1114_v27   ;;  %1215 = vperm.xlu1 %2096, %v1110_v62   ;;  %v1102_v27 = vunpack.c.l.b16 %v1044_v38 }
 0x3cb   :  { %1164 = vperm.xlu0 %2095, %v1093_v5   ;;  %v1027_v5 = vmul.f32 %v3718_v12, %v3438_v23 }
 0x3cd   :  { %v1052_v34 = vpack.c.bf16 %v1028_v51, %v1027_v5 }
 0x3cf   :  { %v1115_v45 = vunpack.c.l.b16 %v1052_v34 }
 0x3d2   :  { %1206 = vperm.xlu1 %2096, %v1107_v63  }
 0x3d3   :  { %1146 = vperm.xlu0 %2095, %v1087_v1   ;;  %v1029_v1 = vmul.f32 %v3720_v40, %v3438_v23 }
 0x3d5   :  { %v1053_v0 = vpack.c.bf16 %v1029_v1, %v1029_v1 }
 0x3da   :  { %1221 = vperm.xlu1 %2096, %v1112_v4   ;;  %v1116_v4 = vunpack.c.h.b16 %v1052_v34 }
 0x3db   :  { %1179 = vperm.xlu0 %2095, %v1098_v47   ;;  %v1117_v47 = vunpack.c.l.b16 %v1053_v0 }
 0x3e3   :  { %1173 = vperm.xlu0 %2095, %v1096_v52  }
 0x3e4   :  { %v1153_v48 = vpop.permute.xlu2 %1152 }
 0x3e5   :  { %v1257_v28 = vperm.slane %v1153_v48, %v2843_v37 }
 0x3eb   :  { %1197 = vperm.xlu0 %2095, %v1104_v35  }
 0x3ec   :  { %v1168_v39 = vpop.permute.xlu2 %1167 }
 0x3f3   :  { %1200 = vperm.xlu0 %2095, %v1105_v18   ;;  %1581 = vadd.xlane.f32.xlu2 %v1580_v42 }
 0x3f4   :  { %v1159_v11 = vpop.permute.xlu2 %1158 }
 0x3f5   :  { %v1261_v46 = vperm.slane %v1159_v11, %v2882_v10 }
 0x3fb   :  { %1191 = vperm.xlu0 %2095, %v1102_v27  }
 0x3fc   :  { %v1141_v56 = vpop.permute.xlu1 %1140  ;;  %v1183_v14 = vpop.permute.xlu2 %1182 }
 0x3fd   :  { %v1120_v62 = vpop.permute.xlu0 %1119  ;;  %v1250_v24 = vperm.slane %v1141_v56, %v2840_v8  ;;  %v1275_v48 = vperm.slane %v1183_v14, %v2843_v37  ;;  %v3723_v14 = vld [vmem:[#allocation11_spill] sm:$0xff] }
 0x3fe   :  { %v1238_v33 = vperm.slane %v1120_v62, %v2837_v3 }
 0x403   :  { %1224 = vperm.xlu0 %2095, %v1113_v19   ;;  %v1266_v19 = vperm.slane %v1168_v39, %v2843_v37 }
 0x404   :  { %v1156_v7 = vpop.permute.xlu1 %1155  ;;  %v1186_v22 = vpop.permute.xlu2 %1185 }
 0x405   :  { %v1123_v16 = vpop.permute.xlu0 %1122  ;;  %v1259_v43 = vperm.slane %v1156_v7, %v2840_v8 }
 0x406   :  { %v1239_v59 = vperm.slane %v1123_v16, %v2843_v37 }
 0x408   :  { %v1240_v63 = vsel %vm496_vm2, %v1239_v59, %v1238_v33 }
 0x40b   :  { %1218 = vperm.xlu0 %2095, %v1111_v53   ;;  %1230 = vperm.xlu2 %2094, %v1115_v45  }
 0x40c   :  { %v1132_v58 = vpop.permute.xlu1 %1131  ;;  %v1177_v5 = vpop.permute.xlu2 %1176 }
 0x40d   :  { %v1135_v31 = vpop.permute.xlu0 %1134  ;;  %v1245_v34 = vperm.slane %v1132_v58, %v2894_v54 }
 0x40e   :  { %v1247_v49 = vperm.slane %v1135_v31, %v2837_v3 }
 0x413   :  { %1233 = vperm.xlu0 %2095, %v1116_v4   ;;  %1236 = vperm.xlu2 %2094, %v1117_v47   ;;  %v1277_v47 = vperm.slane %v1186_v22, %v2840_v8 }
 0x414   :  { %v1171_v27 = vpop.permute.xlu1 %1170  ;;  %v3516_v1 = vpop.permute.xlu2 %1209 }
 0x415   :  { %v1138_v61 = vpop.permute.xlu0 %1137 }
 0x416   :  { %v1248_v6 = vperm.slane %v1138_v61, %v2843_v37 }
 0x418   :  { %v1249_v23 = vsel %vm496_vm2, %v1248_v6, %v1247_v49 }
 0x419   :  { %v1251_v30 = vsel %vm500_vm3, %v1250_v24, %v1249_v23  ;;  %v1268_v24 = vperm.slane %v1171_v27, %v2840_v8 }
 0x41c   :  { %v1162_v51 = vpop.permute.xlu1 %1161  ;;  %v3526_v6 = vpop.permute.xlu2 %1203 }
 0x41d   :  { %v1126_v17 = vpop.permute.xlu0 %1125  ;;  %v1263_v59 = vperm.slane %v1162_v51, %v2894_v54 }
 0x41e   :  { %v1241_v52 = vperm.slane %v1126_v17, %v2840_v8 }
 0x420   :  { %v1242_v21 = vsel %vm500_vm3, %v1241_v52, %v1240_v63 }
 0x424   :  { %v3522_v56 = vpop.permute.xlu1 %1194 }
 0x425   :  { %v1150_v9 = vpop.permute.xlu0 %1149 }
 0x426   :  { %v1256_v60 = vperm.slane %v1150_v9, %v2837_v3 }
 0x428   :  { %v1258_v32 = vsel %vm496_vm2, %v1257_v28, %v1256_v60  ;;  %v3537_v28 = vpop.permute.xlu2 %1227  ;;  %v3721_v60 = vld [vmem:[#allocation14_spill] sm:$0xff] }
 0x429   :  { %v1260_v35 = vsel %vm500_vm3, %v1259_v43, %v1258_v32  ;;  %v1322_v43 = vsel %vm1321_vm15, %v3721_v60, 0 }
 0x42a   :  { %v1262_v20 = vsel %vm504_vm4, %v1261_v46, %v1260_v35  ;;  %1329 = vmatpush.bf16.msra.mxu3 %v1322_v43 }
 0x42b   :  { %v1264_v45 = vsel %vm508_vm5, %v1263_v59, %v1262_v20  ;;  %v3722_v20 = vld [vmem:[#allocation12_spill] sm:$0xff] }
 0x42d   :  { %v1129_v15 = vpop.permute.xlu0 %1128 }
 0x42e   :  { %v1243_v44 = vperm.slane %v1129_v15, %v2882_v10  ;;  %1330 = vmatpush.bf16.msra.mxu3 %v3722_v20  ;;  %v1288_v20 = vperm.slane %v3526_v6, %v2882_v10 }
 0x430   :  { %v1244_v18 = vsel %vm504_vm4, %v1243_v44, %v1242_v21  ;;  %v1189_v21 = vpop.permute.xlu1 %1188 }
 0x431   :  { %v1246_v63 = vsel %vm508_vm5, %v1245_v34, %v1244_v18  ;;  %v1279_v44 = vperm.slane %v1189_v21, %v2882_v10 }
 0x432   :  { %1331 = vmatpush.bf16.msra.mxu3 %v3723_v14 }
 0x435   :  { %v1144_v57 = vpop.permute.xlu0 %1143 }
 0x436   :  { %v1252_v42 = vperm.slane %v1144_v57, %v2882_v10 }
 0x438   :  { %v1253_v38 = vsel %vm504_vm4, %v1252_v42, %v1251_v30  ;;  %v1272_v30 = vperm.slane %v1177_v5, %v2894_v54  ;;  %v3540_v46 = vpop.permute.xlu1 %1212 }
 0x43d   :  { %v1165_v62 = vpop.permute.xlu0 %1164 }
 0x43e   :  { %v1265_v12 = vperm.slane %v1165_v62, %v2837_v3 }
 0x440   :  { %v1267_v2 = vsel %vm496_vm2, %v1266_v19, %v1265_v12  ;;  %v1216_v58 = vpop.permute.xlu1 %1215 }
 0x441   :  { %v1269_v17 = vsel %vm500_vm3, %v1268_v24, %v1267_v2 }
 0x445   :  { %v1147_v16 = vpop.permute.xlu0 %1146 }
 0x446   :  { %v1254_v33 = vperm.slane %v1147_v16, %v2894_v54 }
 0x448   :  { %v1255_v53 = vsel %vm508_vm5, %v1254_v33, %v1253_v38 }
 0x449   :  { %v1310_v40 = vsel %vm573_vm6, %v1255_v53, %v1246_v63 }
 0x44a   :  { %v1311_v31 = vsel %vm575_vm7, %v1264_v45, %v1310_v40 }
 0x44d   :  { %v1180_v0 = vpop.permute.xlu0 %1179 }
 0x44e   :  { %v1274_v4 = vperm.slane %v1180_v0, %v2837_v3 }
 0x450   :  { %v1276_v61 = vsel %vm496_vm2, %v1275_v48, %v1274_v4 }
 0x451   :  { %v1278_v49 = vsel %vm500_vm3, %v1277_v47, %v1276_v61 }
 0x452   :  { %v1280_v27 = vsel %vm504_vm4, %v1279_v44, %v1278_v49 }
 0x455   :  { %v1174_v39 = vpop.permute.xlu0 %1173 }
 0x456   :  { %v1270_v23 = vperm.slane %v1174_v39, %v2882_v10 }
 0x458   :  { %v1271_v52 = vsel %vm504_vm4, %v1270_v23, %v1269_v17 }
 0x459   :  { %v1273_v11 = vsel %vm508_vm5, %v1272_v30, %v1271_v52 }
 0x45a   :  { %v1312_v7 = vsel %vm577_vm8, %v1273_v11, %v1311_v31  ;;  %v1283_v11 = vperm.slane %v3522_v56, %v2837_v3 }
 0x45d   :  { %v3535_v9 = vpop.permute.xlu0 %1197 }
 0x465   :  { %v3542_v32 = vpop.permute.xlu0 %1200 }
 0x466   :  { %v1582_v35 = vpop.xlane.xlu2 %1581  ;;  %v1286_v30 = vperm.slane %v3542_v32, %v2840_v8 }
 0x467   :  { %2298 = vrcp.f32 %v1582_v35 }
 0x46d   :  { %v2299_v15 = vpop.eup %2298  ;;  %v1192_v18 = vpop.permute.xlu0 %1191 }
 0x46e   :  { %v1281_v57 = vperm.slane %v1192_v18, %v2894_v54  ;;  %v1587_v22 = vperm.slane %v2299_v15, 2  ;;  %v1586_v42 = vperm.slane %v2299_v15, 1  ;;  %v1585_v38 = vperm.slane %v2299_v15, 0  ;;  %v1231_v24 = vpop.permute.xlu2 %1230 }
 0x46f   :  { %v1590_v62 = vperm.slane %v2299_v15, 5  ;;  %v1589_v19 = vperm.slane %v2299_v15, 4  ;;  %v1588_v34 = vperm.slane %v2299_v15, 3  ;;  %v1592_v47 = vperm.slane %v2299_v15, 7 }
 0x470   :  { %v1282_v12 = vsel %vm508_vm5, %v1281_v57, %v1280_v27  ;;  %v1603_v5 = vmul.f32 %v3345_v26, %v1587_v22  ;;  %v1602_v2 = vmul.f32 %v3340_v36, %v1586_v42  ;;  %v1601_v51 = vmul.f32 %v3342_v13, %v1585_v38  ;;  %v1207_v36 = vpop.permute.xlu1 %1206 }
 0x471   :  { %v3554_v16 = vsel %vm579_vm9, %v1282_v12, %v1312_v7  ;;  %v1606_v53 = vmul.f32 %v3356_v29, %v1590_v62  ;;  %v1605_v0 = vmul.f32 %v3351_v55, %v1589_v19  ;;  %v1604_v26 = vmul.f32 %v3353_v25, %v1588_v34 }
 0x472   :  { %v1611_v33 = vpack.c.bf16 %v1603_v5, %v1603_v5  ;;  %v1610_v59 = vpack.c.bf16 %v1602_v2, %v1602_v2  ;;  %v1609_v63 = vpack.c.bf16 %v1601_v51, %v1601_v51  ;;  %v1591_v49 = vperm.slane %v2299_v15, 6 }
 0x473   :  { %v1614_v13 = vpack.c.bf16 %v1606_v53, %v1606_v53  ;;  %v1613_v4 = vpack.c.bf16 %v1605_v0, %v1605_v0  ;;  %v1612_v61 = vpack.c.bf16 %v1604_v26, %v1604_v26  ;;  %v1284_v29 = vperm.slane %v3535_v9, %v2843_v37 }
 0x474   :  { %v1627_v45 = vunpack.c.l.b16 %v1611_v33  ;;  %v1626_v40 = vunpack.c.l.b16 %v1610_v59  ;;  %v1625_v31 = vunpack.c.l.b16 %v1609_v63  ;;  %v1608_v55 = vmul.f32 %v3360_v41, %v1592_v47  ;;  %v3724_v33 = vld [vmem:[#allocation13_spill] sm:$0xff] }
 0x475   :  { %v1225_v48 = vpop.permute.xlu0 %1224  ;;  %v1630_v39 = vunpack.c.l.b16 %v1614_v13  ;;  %v1629_v23 = vunpack.c.l.b16 %v1613_v4  ;;  %v1293_v25 = vperm.slane %v3540_v46, %v2843_v37  ;;  %v1628_v52 = vunpack.c.l.b16 %v1612_v61 }
 0x476   :  { %1640 = vperm.xlu2 %2094, %v1627_v45   ;;  %1637 = vperm.xlu0 %2095, %v1626_v40   ;;  %v1607_v21 = vmul.f32 %v3362_v50, %v1591_v49  ;;  %v1295_v7 = vperm.slane %v1216_v58, %v2840_v8  ;;  %v1292_v41 = vperm.slane %v3516_v1, %v2837_v3  ;;  %v1237_v57 = vpop.permute.xlu2 %1236 }
 0x477   :  { %1634 = vperm.xlu1 %2096, %v1625_v31   ;;  %v1285_v60 = vsel %vm496_vm2, %v1284_v29, %v1283_v11  ;;  %v1301_v43 = vperm.slane %v1225_v48, %v2837_v3  ;;  %v1616_v46 = vpack.c.bf16 %v1608_v55, %v1608_v55  ;;  %v1302_v1 = vperm.slane %v3537_v28, %v2843_v37  ;;  %v2073_v11 = vld [vmem:[#allocation5 + $0x68] sm:$0xff] }
 0x478   :  { %v1294_v50 = vsel %vm496_vm2, %v1293_v25, %v1292_v41  ;;  %v1222_v32 = vpop.permute.xlu1 %1221  ;;  %v1287_v56 = vsel %vm500_vm3, %v1286_v30, %v1285_v60  ;;  %v1615_v35 = vpack.c.bf16 %v1607_v21, %v1607_v21  ;;  %v1290_v42 = vperm.slane %v1207_v36, %v2894_v54  ;;  %1760 = vmatpush.bf16.msrb.mxu3 %v2073_v11  ;;  %v2071_v41 = vld [vmem:[#allocation5 + $0x58] sm:$0xff] }
 0x479   :  { %v1296_v14 = vsel %vm500_vm3, %v1295_v7, %v1294_v50  ;;  %v1299_v44 = vperm.slane %v1222_v32, %v2894_v54  ;;  %v1289_v58 = vsel %vm504_vm4, %v1288_v20, %v1287_v56  ;;  %v1303_v18 = vsel %vm496_vm2, %v1302_v1, %v1301_v43  ;;  %v2072_v7 = vld [vmem:[#allocation5 + $0x60] sm:$0xff]  ;;  %v2079_v50 = vld [vmem:[#allocation5 + $0x98] sm:$0xff]  ;;  %v2078_v32 = vld [vmem:[#allocation5 + $0x90] sm:$0xff] }
 0x47a   :  { %v1632_v22 = vunpack.c.l.b16 %v1616_v46  ;;  %v1304_v38 = vperm.slane %v1231_v24, %v2840_v8  ;;  %v1631_v27 = vunpack.c.l.b16 %v1615_v35  ;;  %v1291_v62 = vsel %vm508_vm5, %v1290_v42, %v1289_v58  ;;  %v2068_v46 = vld [vmem:[#allocation5 + $0x40] sm:$0xff]  ;;  %1827 = vmatpush.bf16.msra.mxu0 %v2079_v50  ;;  %v2077_v56 = vld [vmem:[#allocation5 + $0x88] sm:$0xff]  ;;  %v2075_v20 = vld [vmem:[#allocation5 + $0x78] sm:$0xff] }
 0x47b   :  { %v1308_v19 = vperm.slane %v1237_v57, %v2894_v54  ;;  %v1314_v2 = vsel %vm581_vm10, %v1291_v62, %v3554_v16  ;;  %v1677_v54 = vsel %vm1676_vm1, %v3724_v33, 0  ;;  %v2076_v35 = vld [vmem:[#allocation5 + $0x80] sm:$0xff]  ;;  %vm1701_vm2 = vcmask 523264   ;;  %v2074_v57 = vld [vmem:[#allocation5 + $0x70] sm:$0xff]  ;;  %v2102_v62 = vld [vmem:[%s3644_s5 + $0x20] ss:$0 sm:$0xff] }
 0x47c   :  { %v1305_v12 = vsel %vm500_vm3, %v1304_v38, %v1303_v18  ;;  %1686 = vmatpush.bf16.msrb.mxu1 %v1677_v54  ;;  %1761 = vmatpush.bf16.msrb.mxu3 %v2072_v7  ;;  %vm1754_vm3 = vcmask 785408   ;;  %v2080_v33 = vld [vmem:[#allocation5 + $0xa0] sm:$0xff] }
 0x47d   :  { %v1219_v17 = vpop.permute.xlu0 %1218 }
 0x47e   :  { %1649 = vperm.xlu2 %2094, %v1630_v39   ;;  %1646 = vperm.xlu0 %2095, %v1629_v23   ;;  %v1297_v9 = vperm.slane %v1219_v17, %v2882_v10 }
 0x47f   :  { %1643 = vperm.xlu1 %2096, %v1628_v52   ;;  %1828 = vmatpush.bf16.msra.mxu0 %v2078_v32 }
 0x480   :  { %v1298_v15 = vsel %vm504_vm4, %v1297_v9, %v1296_v14  ;;  %1762 = vmatpush.bf16.msrb.mxu3 %v2071_v41  ;;  %v2069_v9 = vld [vmem:[#allocation5 + $0x48] sm:$0xff]  ;;  %v2304_v14 = vld [vmem:[%s3639_s0] sm:$0xff] }
 0x481   :  { %v1300_v37 = vsel %vm508_vm5, %v1299_v44, %v1298_v15 }
 0x482   :  { %v1315_v51 = vsel %vm583_vm11, %v1300_v37, %v1314_v2  ;;  %v2085_v37 = vld [vmem:[#allocation5 + $0xc8] sm:$0xff] }
 0x483   :  { %1829 = vmatpush.bf16.msra.mxu0 %v2077_v56  ;;  %1914 = vmatpush.bf16.msra.mxu1 %v2085_v37 }
 0x485   :  { %v1234_v6 = vpop.permute.xlu0 %1233 }
 0x486   :  { %v1306_v28 = vperm.slane %v1234_v6, %v2882_v10  ;;  %1655 = vperm.xlu0 %2095, %v1632_v22   ;;  %v2101_v22 = vld [vmem:[%s3644_s5 + $0x18] ss:$0 sm:$0xff] }
 0x487   :  { %1652 = vperm.xlu1 %2096, %v1631_v27   ;;  %1830 = vmatpush.bf16.msra.mxu0 %v2076_v35 }
 0x488   :  { %v1307_v5 = vsel %vm504_vm4, %v1306_v28, %v1305_v12  ;;  %v2084_v28 = vld [vmem:[#allocation5 + $0xc0] sm:$0xff] }
 0x489   :  { %v1309_v8 = vsel %vm508_vm5, %v1308_v19, %v1307_v5  ;;  %1915 = vmatpush.bf16.msra.mxu1 %v2084_v28  ;;  %v2083_v19 = vld [vmem:[#allocation5 + $0xb8] sm:$0xff] }
 0x48a   :  { %v1316_v34 = vsel %vm585_vm12, %v1309_v8, %v1315_v51  ;;  %v2082_v8 = vld [vmem:[#allocation5 + $0xb0] sm:$0xff]  ;;  %v2081_v51 = vld [vmem:[#allocation5 + $0xa8] sm:$0xff] }
 0x48b   :  { %v1317_v10 = vpack.c.b16 %v1316_v34, %v1316_v34  ;;  %1831 = vmatpush.bf16.msra.mxu0 %v2075_v20 }
 0x48d   :  { %1973 = vmatmul.msk.bf16.vlgmr.msra.gmra.mxu3 %vm588_vm13, %v1317_v10  ;;  %1916 = vmatpush.bf16.msra.mxu1 %v2083_v19 }
 0x48f   :  { %1832 = vmatpush.bf16.msra.mxu0 %v2074_v57 }
 0x491   :  { %1917 = vmatpush.bf16.msra.mxu1 %v2082_v8 }
 0x495   :  { %1918 = vmatpush.bf16.msra.mxu1 %v2081_v51 }
 0x499   :  { %1919 = vmatpush.bf16.msra.mxu1 %v2080_v33 }
 0x4d0   :  { %v1641_v53 = vpop.permute.xlu2 %1640 }
 0x4d1   :  { %v1659_v48 = vperm.slane %v1641_v53, %v2837_v3 }
 0x4d8   :  { %v1650_v47 = vpop.permute.xlu2 %1649 }
 0x4d9   :  { %v1662_v24 = vperm.slane %v1650_v47, %v2837_v3 }
 0x4e8   :  { %v1638_v59 = vpop.permute.xlu0 %1637 }
 0x4e9   :  { %v1635_v63 = vpop.permute.xlu1 %1634  ;;  %v1658_v16 = vperm.slane %v1638_v59, %v2837_v3 }
 0x4ea   :  { %v1657_v45 = vperm.slane %v1635_v63, %v2837_v3 }
 0x4ec   :  { %v1665_v31 = vsel %vm573_vm6, %v1658_v16, %v1657_v45 }
 0x4ed   :  { %v1666_v36 = vsel %vm575_vm7, %v1659_v48, %v1665_v31 }
 0x4f0   :  { %v1647_v40 = vpop.permute.xlu0 %1646 }
 0x4f1   :  { %v1644_v0 = vpop.permute.xlu1 %1643  ;;  %v1661_v13 = vperm.slane %v1647_v40, %v2837_v3 }
 0x4f2   :  { %v1660_v26 = vperm.slane %v1644_v0, %v2837_v3 }
 0x4f4   :  { %v1667_v4 = vsel %vm577_vm8, %v1660_v26, %v1666_v36 }
 0x4f5   :  { %v1668_v61 = vsel %vm579_vm9, %v1661_v13, %v1667_v4  ;;  %v2103_v4 = vld [vmem:[%s3644_s5 + $0x28] ss:$0 sm:$0xff] }
 0x4f6   :  { %v1669_v55 = vsel %vm581_vm10, %v1662_v24, %v1668_v61 }
 0x4f8   :  { %v1656_v49 = vpop.permute.xlu0 %1655 }
 0x4f9   :  { %v1653_v29 = vpop.permute.xlu1 %1652  ;;  %v1664_v39 = vperm.slane %v1656_v49, %v2837_v3 }
 0x4fa   :  { %v1663_v23 = vperm.slane %v1653_v29, %v2837_v3  ;;  %v2070_v3 = vld [vmem:[#allocation5 + $0x50] sm:$0xff] }
 0x4fb   :  { %1763 = vmatpush.bf16.msrb.mxu3 %v2070_v3 }
 0x4fc   :  { %v1670_v25 = vsel %vm583_vm11, %v1663_v23, %v1669_v55 }
 0x4fd   :  { %v1671_v30 = vsel %vm585_vm12, %v1664_v39, %v1670_v25 }
 0x4fe   :  { %v1672_v17 = vpack.c.b16 %v1671_v30, %v1671_v30 }
 0x4ff   :  { %1764 = vmatpush.bf16.msrb.mxu3 %v2069_v9 }
 0x500   :  { %1983 = vmatmul.msk.bf16.vlgmr.msrb.gmra.mxu1 %vm1487_vm14, %v1672_v17 }
 0x503   :  { %1765 = vmatpush.bf16.msrb.mxu3 %v2068_v46 }
 0x510   :  { %v1333_v52 = vpop.f32.mrf.mxu3 }
 0x511   :  { %1693 = vrot.lane.b32.xlu2 %v1333_v52, %s2387_s22 }
 0x518   :  { %v1335_v21 = vpop.f32.mrf.mxu3 }
 0x56b   :  { %v1694_v1 = vpop.permute.xlu2 %1693 }
 0x56c   :  { %v1700_v15 = vsel %vm76_vm0, %v2304_v14, %v1694_v1 }
 0x57d   :  { %v1688_v60 = vpop.f32.mrf.mxu1 }
 0x57e   :  { %1697 = vrot.lane.b32.xlu1 %v1688_v60, %s2385_s7 }
 0x585   :  { %v1690_v43 = vpop.f32.mrf.mxu1 }
 0x5f0   :  { %v1698_v44 = vpop.permute.xlu1 %1697 }
 0x5f1   :  { %v1702_v58 = vsel %vm1701_vm2, %v1700_v15, %v1698_v44 }
 0x5f2   :  { %v1703_v18 = vpack.c.bf16 %v1702_v58, %v1702_v58 }
 0x5f4   :  { %2008 = vmatmul.msk.bf16.vlgmr.msrb.gmra.mxu3 %vm1754_vm3, %v1703_v18 }
 0x677   :  { %v1767_v42 = vpop.f32.mrf.mxu3 }
 0x678   :  { %v1768_v38 = vadd.f32 %v2101_v22, %v1767_v42 }
 0x67a   :  { %v1771_v6 = vpack.c.bf16 %v1768_v38, %v1768_v38 }
 0x67c   :  { %2033 = vmatmul.msk.bf16.vlgmr.msra.gmra.mxu0 %vm1754_vm3, %v1771_v6 }
 0x67f   :  { %v1769_v27 = vpop.f32.mrf.mxu3 }
 0x6f9   :  { %v1834_v12 = vpop.f32.mrf.mxu0 }
 0x6fa   :  { %v1835_v5 = vadd.f32 %v2102_v62, %v1834_v12 }
 0x6fc   :  { %v2034_v2 = vmul.f32 -1.442695, %v1835_v5 }
 0x6fe   :  { %2300 = vpow2.f32 %v2034_v2 }
 0x701   :  { %v1836_v34 = vpop.f32.mrf.mxu0 }
 0x704   :  { %v2301_v10 = vpop.eup %2300 }
 0x705   :  { %v1841_v54 = vadd.f32 1.0, %v2301_v10 }
 0x707   :  { %2302 = vrcp.f32 %v1841_v54  ;;  %v1853_v45 = vand.u32 2147483648, %v1841_v54  ;;  %v1851_v40 = vand.u32 2147483647, %v1841_v54  ;;  %vm1847_vm5 = vweird.f32 %v1841_v54 }
 0x709   :  { %v1854_v0 = vor.u32 1.1754944e-38, %v1853_v45  ;;  %vm1852_vm7 = vcmp.eq.f32.partialorder %v1851_v40, 8.507059e+37 }
 0x70d   :  { %v2303_v59 = vpop.eup %2302 }
 0x70e   :  { %v1843_v63 = vmul.f32 %v2303_v59, %v1841_v54  ;;  %vm1848_vm4 = vweird.f32 %v2303_v59 }
 0x70f   :  { %vm1849_vm6 = vmor %vm1847_vm5, %vm1848_vm4 }
 0x710   :  { %v1844_v53 = vsub.f32 1.0, %v1843_v63 }
 0x712   :  { %v1845_v16 = vmul.f32 %v2303_v59, %v1844_v53 }
 0x714   :  { %v1846_v31 = vadd.f32 %v2303_v59, %v1845_v16 }
 0x716   :  { %v1850_v48 = vsel %vm1849_vm6, %v2303_v59, %v1846_v31 }
 0x717   :  { %v1855_v26 = vsel %vm1852_vm7, %v1854_v0, %v1850_v48 }
 0x718   :  { %v1857_v36 = vmul.f32 %v1855_v26, %v1768_v38 }
 0x71a   :  { %v1858_v13 = vpack.c.bf16 %v1857_v36, %v1857_v36 }
 0x71c   :  { %2059 = vmatmul.msk.bf16.vlgmr.msra.gmra.mxu1 %vm1754_vm3, %v1858_v13 }
 0x799   :  { %v1921_v47 = vpop.f32.mrf.mxu1 }
 0x79a   :  { %v1922_v61 = vadd.f32 %v2103_v4, %v1921_v47 }
 0x79c   :  { %1925 = vst.msk [vmem:[#allocation7] sm:$0xff] %vm76_vm0, %v1922_v61 }
 0x79d   :  { %1936 = dma.vmem_to_hbm [thread:$0]  %s1932_s13, 128, %s1934_s15, [#allocation4]  }
 0x7a1   :  { %v1923_v49 = vpop.f32.mrf.mxu1 }
 0x7a2   :  { %2381 = dma.done.wait [#allocation4], 128  }
 0x7a3   :  { %2382 = vsyncadd [#allocation4], 4294967168 }
 0x7a4   :  { %1941 = vsyncpa [#allocation3], 1 }
 0x7a5   :  { %1942 = vsyncpa [#allocation6], 1 }
 0x7a6   :  { %1943 = vsyncpa [#allocation4], 1 }

</bundles_post_ra>
